<compile_context>
chip_gen: v7x
topology: tpu7x:2x2x1
jax: 0.10.0
libtpu: 0.0.40
codegen_flags: <defaults>
</compile_context>

<pallas_src>
import functools
import math

import jax
import jax.numpy as jnp
from jax.experimental import pallas as pl
from jax.experimental.pallas import tpu as pltpu


def _round_up(x, m):
    return ((x + m - 1) // m) * m


def _choose_tiling(n, max_tile):
    """Pick (n_pad, tile_n): lane-dense tiles (multiple of 128).

    Tiny batches -> one step; otherwise prefer an even 2-step grid (v7x
    megacore sharding); very large batches fall back to fixed max_tile tiles.
    """
    n128 = _round_up(max(n, 128), 128)
    if n128 <= 128:
        return 128, 128
    if n128 <= 2 * max_tile:
        n_pad = _round_up(n128, 256)
        return n_pad, n_pad // 2
    tile = max_tile
    return _round_up(n128, tile), tile


def _pinn_kernel(w0p_ref, wh_ref, bh_ref, wo_ref, bo_ref, x_ref, o_ref, *, n_hidden):
    """Fused MLP. Activations are (features, tile_n): batch along lanes.

    Layer 0 bias is folded into the matmul via the constant-1 row of x.
    """
    # Layer 0: (width, 8) @ (8, tile_n)  (bias rides the MXU via the ones row).
    h = jnp.dot(w0p_ref[...], x_ref[...], preferred_element_type=jnp.float32)
    h = jnp.tanh(h)

    # Hidden layers: exactly-shaped (width, width) weights, static index -> no relayout.
    for li in range(n_hidden):
        w = wh_ref[li]                       # (width, width)
        b = bh_ref[li]                       # (width, 1) -> lane broadcast
        h = jnp.tanh(jnp.dot(w, h, preferred_element_type=jnp.float32) + b)

    # Output layer (no tanh).
    out = jnp.dot(wo_ref[...], h, preferred_element_type=jnp.float32) + bo_ref[...]
    o_ref[...] = out.astype(o_ref.dtype)


def pack_params(weights, biases, *, in_rows=8):
    """Split params into exactly-shaped resident f32 buffers.

    w0p: (width, in_rows) = [W0 | b0 | 0...]   (layer-0 bias folded into matmul)
    wh : (n_hidden, width, width)
    bh : (n_hidden, width, 1)
    wo : (out_dim, width)
    bo : (out_dim, 1)
    """
    assert len(weights) >= 3, "expected at least Linear-in, one hidden, Linear-out"
    w0, b0 = weights[0], biases[0]
    fout0, fin0 = w0.shape
    assert fin0 + 1 <= in_rows
    w0p = jnp.zeros((fout0, in_rows), jnp.float32)
    w0p = w0p.at[:, :fin0].set(w0.astype(jnp.float32))
    w0p = w0p.at[:, fin0].set(b0.astype(jnp.float32))

    wh = jnp.stack([w.astype(jnp.float32) for w in weights[1:-1]])          # (nh, w, w)
    bh = jnp.stack([b.astype(jnp.float32)[:, None] for b in biases[1:-1]])  # (nh, w, 1)

    wo = weights[-1].astype(jnp.float32)             # (out, width)
    bo = biases[-1].astype(jnp.float32)[:, None]     # (out, 1)
    return w0p, wh, bh, wo, bo


def pinn_forward(xy, weights, biases, *, max_tile_n=4096):
    """Fused PINN MLP forward.

    xy:         (N, 2) float32 collocation points.
    weights[i]: (out_i, in_i)  (PyTorch nn.Linear convention).
    biases[i]:  (out_i,)
    Returns (N, out_last) float32.
    """
    N, in_dim = xy.shape
    assert in_dim == weights[0].shape[1]
    out_dim = weights[-1].shape[0]
    width = weights[0].shape[0]
    n_hidden = len(weights) - 2

    w0p, wh, bh, wo, bo = pack_params(weights, biases)

    n_pad, tile_n = _choose_tiling(N, max_tile_n)
    grid = (n_pad // tile_n,)

    # Lane-dense, sublane-aligned input: (8, n_pad); rows 0..in_dim-1 = xy.T,
    # row in_dim = 1.0 (carries the layer-0 bias through the MXU), rest 0.
    # TODO(synk): for 1e6+ points, accept feature-major (2, N) input upstream to
    # avoid this extra HBM transpose/pad pass.
    x_t = jnp.zeros((8, n_pad), jnp.float32)
    x_t = x_t.at[:in_dim, :N].set(xy.T.astype(jnp.float32))
    x_t = x_t.at[in_dim, :].set(1.0)

    flops = 2 * n_pad * (8 * width + n_hidden * width * width + width * out_dim)
    transc = n_pad * width * (1 + n_hidden)
    param_bytes = 4 * (w0p.size + wh.size + bh.size + wo.size + bo.size)
    bytes_accessed = x_t.size * 4 + out_dim * n_pad * 4 + param_bytes

    kernel = functools.partial(_pinn_kernel, n_hidden=n_hidden)

    const2 = lambda i: (0, 0)
    const3 = lambda i: (0, 0, 0)

    out_t = pl.pallas_call(
        kernel,
        out_shape=jax.ShapeDtypeStruct((out_dim, n_pad), jnp.float32),
        grid_spec=pltpu.PrefetchScalarGridSpec(
            num_scalar_prefetch=0,
            grid=grid,
            in_specs=[
                # Resident parameters: exact shapes, constant block index -> DMA'd once.
                pl.BlockSpec(w0p.shape, const2),
                pl.BlockSpec(wh.shape, const3),
                pl.BlockSpec(bh.shape, const3),
                pl.BlockSpec(wo.shape, const2),
                pl.BlockSpec(bo.shape, const2),
                # Lane-dense input tile: (8, tile_n).
                pl.BlockSpec((8, tile_n), lambda i: (0, i)),
            ],
            out_specs=pl.BlockSpec((out_dim, tile_n), lambda i: (0, i)),
        ),
        compiler_params=pltpu.CompilerParams(
            dimension_semantics=("parallel",),       # batch tiles shard across TCs (v7x)
            vmem_limit_bytes=32 * 1024 * 1024,       # headroom for large tiles, safe on all gens
        ),
        cost_estimate=pl.CostEstimate(
            flops=flops, transcendentals=transc, bytes_accessed=bytes_accessed),
    )(w0p, wh, bh, wo, bo, x_t)

    return out_t[:, :N].T


def init_pinn_params(key, width=64, depth=5):
    """PyTorch-Linear-style init. Layers: Linear(2,w), (depth-1) x Linear(w,w), Linear(w,2)."""
    dims = [2] + [width] * depth + [2]
    weights, biases = [], []
    for li in range(len(dims) - 1):
        fan_in, fan_out = dims[li], dims[li + 1]
        key, kw, kb = jax.random.split(key, 3)
        bound = 1.0 / math.sqrt(fan_in)
        w = jax.random.uniform(kw, (fan_out, fan_in), jnp.float32, -bound, bound)
        b = jax.random.uniform(kb, (fan_out,), jnp.float32, -bound, bound)
        weights.append(w)
        biases.append(b)
    return weights, biases


def pinn_reference(xy, weights, biases):
    h = xy
    n = len(weights)
    for li, (w, b) in enumerate(zip(weights, biases)):
        h = h @ w.T + b
        if li != n - 1:
            h = jnp.tanh(h)
    return h


if __name__ == "__main__":
    key = jax.random.PRNGKey(0)
    key, kx = jax.random.split(key)

    width, depth = 64, 5        # module defaults: Linear(2,64) -> 4x Linear(64,64) -> Linear(64,2)
    N = 1000                    # ragged batch -> n_pad=1024, tile_n=512, grid=(2,)

    xy = jax.random.uniform(kx, (N, 2), jnp.float32, -1.0, 1.0)
    weights, biases = init_pinn_params(key, width=width, depth=depth)

    out = pinn_forward(xy, weights, biases)
    out = jax.block_until_ready(out)

    ref = pinn_reference(xy, weights, biases)
    assert out.shape == (N, 2), out.shape
    max_err = float(jnp.max(jnp.abs(out - ref)))
    assert jnp.allclose(out, ref, atol=1e-5, rtol=1e-5), max_err

    print("KERNEL_OK")
</pallas_src>

<mosaic_0001>
module attributes {stable_mosaic.version = 11 : i64} {
  func.func @_pinn_kernel(%arg0: i32, %arg1: memref<64x8xf32, #tpu.memory_space<vmem>>, %arg2: memref<4x64x64xf32, #tpu.memory_space<vmem>>, %arg3: memref<4x64x1xf32, #tpu.memory_space<vmem>>, %arg4: memref<2x64xf32, #tpu.memory_space<vmem>>, %arg5: memref<2x1xf32, #tpu.memory_space<vmem>>, %arg6: memref<8x512xf32, #tpu.memory_space<vmem>>, %arg7: memref<2x512xf32, #tpu.memory_space<vmem>>) attributes {dimension_semantics = [#tpu.dimension_semantics<parallel>], iteration_bounds = array<i64: 2>, scalar_prefetch = 0 : i64, scratch_operands = 0 : i64, tpu.core_type = #tpu.core_type<tc>, window_params = [{pipeline_mode = #tpu.pipeline_mode<synchronous>, transform_indices = @transform_0, window_bounds = array<i64: 64, 8>}, {pipeline_mode = #tpu.pipeline_mode<synchronous>, transform_indices = @transform_1, window_bounds = array<i64: 4, 64, 64>}, {pipeline_mode = #tpu.pipeline_mode<synchronous>, transform_indices = @transform_2, window_bounds = array<i64: 4, 64, 1>}, {pipeline_mode = #tpu.pipeline_mode<synchronous>, transform_indices = @transform_3, window_bounds = array<i64: 2, 64>}, {pipeline_mode = #tpu.pipeline_mode<synchronous>, transform_indices = @transform_4, window_bounds = array<i64: 2, 1>}, {transform_indices = @transform_5, window_bounds = array<i64: 8, 512>}, {transform_indices = @transform_6, window_bounds = array<i64: 2, 512>}]} {
    %c0 = arith.constant 0 : index
    %c0_0 = arith.constant 0 : index
    %0 = vector.load %arg1[%c0, %c0_0] : memref<64x8xf32, #tpu.memory_space<vmem>>, vector<64x8xf32>
    %c0_1 = arith.constant 0 : index
    %c0_2 = arith.constant 0 : index
    %1 = vector.load %arg6[%c0_1, %c0_2] : memref<8x512xf32, #tpu.memory_space<vmem>>, vector<8x512xf32>
    %cst = arith.constant dense<0.000000e+00> : vector<64x512xf32>
    %2 = tpu.matmul %0, %1, %cst {dimension_numbers = #tpu.dot_dimension_numbers<[1], [0], [0], [1], [0, 0, 1, 1], [], []>} : vector<64x8xf32>, vector<8x512xf32>, vector<64x512xf32> -> vector<64x512xf32>
    %3 = math.tanh %2 : vector<64x512xf32>
    %c0_3 = arith.constant 0 : index
    %c0_4 = arith.constant 0 : index
    %c0_5 = arith.constant 0 : index
    %4 = vector.load %arg2[%c0_3, %c0_4, %c0_5] : memref<4x64x64xf32, #tpu.memory_space<vmem>>, vector<1x64x64xf32>
    %5 = vector.shape_cast %4 : vector<1x64x64xf32> to vector<64x64xf32>
    %c0_6 = arith.constant 0 : index
    %c0_7 = arith.constant 0 : index
    %c0_8 = arith.constant 0 : index
    %6 = vector.load %arg3[%c0_6, %c0_7, %c0_8] : memref<4x64x1xf32, #tpu.memory_space<vmem>>, vector<1x64x1xf32>
    %7 = vector.shape_cast %6 : vector<1x64x1xf32> to vector<64x1xf32>
    %cst_9 = arith.constant dense<0.000000e+00> : vector<64x512xf32>
    %8 = tpu.matmul %5, %3, %cst_9 {dimension_numbers = #tpu.dot_dimension_numbers<[1], [0], [0], [1], [0, 0, 1, 1], [], []>} : vector<64x64xf32>, vector<64x512xf32>, vector<64x512xf32> -> vector<64x512xf32>
    %9 = vector.broadcast %7 : vector<64x1xf32> to vector<64x512xf32>
    %10 = arith.addf %8, %9 : vector<64x512xf32>
    %11 = math.tanh %10 : vector<64x512xf32>
    %c1 = arith.constant 1 : index
    %c0_10 = arith.constant 0 : index
    %c0_11 = arith.constant 0 : index
    %12 = vector.load %arg2[%c1, %c0_10, %c0_11] : memref<4x64x64xf32, #tpu.memory_space<vmem>>, vector<1x64x64xf32>
    %13 = vector.shape_cast %12 : vector<1x64x64xf32> to vector<64x64xf32>
    %c1_12 = arith.constant 1 : index
    %c0_13 = arith.constant 0 : index
    %c0_14 = arith.constant 0 : index
    %14 = vector.load %arg3[%c1_12, %c0_13, %c0_14] : memref<4x64x1xf32, #tpu.memory_space<vmem>>, vector<1x64x1xf32>
    %15 = vector.shape_cast %14 : vector<1x64x1xf32> to vector<64x1xf32>
    %cst_15 = arith.constant dense<0.000000e+00> : vector<64x512xf32>
    %16 = tpu.matmul %13, %11, %cst_15 {dimension_numbers = #tpu.dot_dimension_numbers<[1], [0], [0], [1], [0, 0, 1, 1], [], []>} : vector<64x64xf32>, vector<64x512xf32>, vector<64x512xf32> -> vector<64x512xf32>
    %17 = vector.broadcast %15 : vector<64x1xf32> to vector<64x512xf32>
    %18 = arith.addf %16, %17 : vector<64x512xf32>
    %19 = math.tanh %18 : vector<64x512xf32>
    %c2 = arith.constant 2 : index
    %c0_16 = arith.constant 0 : index
    %c0_17 = arith.constant 0 : index
    %20 = vector.load %arg2[%c2, %c0_16, %c0_17] : memref<4x64x64xf32, #tpu.memory_space<vmem>>, vector<1x64x64xf32>
    %21 = vector.shape_cast %20 : vector<1x64x64xf32> to vector<64x64xf32>
    %c2_18 = arith.constant 2 : index
    %c0_19 = arith.constant 0 : index
    %c0_20 = arith.constant 0 : index
    %22 = vector.load %arg3[%c2_18, %c0_19, %c0_20] : memref<4x64x1xf32, #tpu.memory_space<vmem>>, vector<1x64x1xf32>
    %23 = vector.shape_cast %22 : vector<1x64x1xf32> to vector<64x1xf32>
    %cst_21 = arith.constant dense<0.000000e+00> : vector<64x512xf32>
    %24 = tpu.matmul %21, %19, %cst_21 {dimension_numbers = #tpu.dot_dimension_numbers<[1], [0], [0], [1], [0, 0, 1, 1], [], []>} : vector<64x64xf32>, vector<64x512xf32>, vector<64x512xf32> -> vector<64x512xf32>
    %25 = vector.broadcast %23 : vector<64x1xf32> to vector<64x512xf32>
    %26 = arith.addf %24, %25 : vector<64x512xf32>
    %27 = math.tanh %26 : vector<64x512xf32>
    %c3 = arith.constant 3 : index
    %c0_22 = arith.constant 0 : index
    %c0_23 = arith.constant 0 : index
    %28 = vector.load %arg2[%c3, %c0_22, %c0_23] : memref<4x64x64xf32, #tpu.memory_space<vmem>>, vector<1x64x64xf32>
    %29 = vector.shape_cast %28 : vector<1x64x64xf32> to vector<64x64xf32>
    %c3_24 = arith.constant 3 : index
    %c0_25 = arith.constant 0 : index
    %c0_26 = arith.constant 0 : index
    %30 = vector.load %arg3[%c3_24, %c0_25, %c0_26] : memref<4x64x1xf32, #tpu.memory_space<vmem>>, vector<1x64x1xf32>
    %31 = vector.shape_cast %30 : vector<1x64x1xf32> to vector<64x1xf32>
    %cst_27 = arith.constant dense<0.000000e+00> : vector<64x512xf32>
    %32 = tpu.matmul %29, %27, %cst_27 {dimension_numbers = #tpu.dot_dimension_numbers<[1], [0], [0], [1], [0, 0, 1, 1], [], []>} : vector<64x64xf32>, vector<64x512xf32>, vector<64x512xf32> -> vector<64x512xf32>
    %33 = vector.broadcast %31 : vector<64x1xf32> to vector<64x512xf32>
    %34 = arith.addf %32, %33 : vector<64x512xf32>
    %35 = math.tanh %34 : vector<64x512xf32>
    %c0_28 = arith.constant 0 : index
    %c0_29 = arith.constant 0 : index
    %36 = vector.load %arg4[%c0_28, %c0_29] : memref<2x64xf32, #tpu.memory_space<vmem>>, vector<2x64xf32>
    %cst_30 = arith.constant dense<0.000000e+00> : vector<2x512xf32>
    %37 = tpu.matmul %36, %35, %cst_30 {dimension_numbers = #tpu.dot_dimension_numbers<[1], [0], [0], [1], [0, 0, 1, 1], [], []>} : vector<2x64xf32>, vector<64x512xf32>, vector<2x512xf32> -> vector<2x512xf32>
    %c0_31 = arith.constant 0 : index
    %c0_32 = arith.constant 0 : index
    %38 = vector.load %arg5[%c0_31, %c0_32] : memref<2x1xf32, #tpu.memory_space<vmem>>, vector<2x1xf32>
    %39 = vector.broadcast %38 : vector<2x1xf32> to vector<2x512xf32>
    %40 = arith.addf %37, %39 : vector<2x512xf32>
    %c0_33 = arith.constant 0 : index
    %c0_34 = arith.constant 0 : index
    %41 = vector.load %arg7[%c0_33, %c0_34] : memref<2x512xf32, #tpu.memory_space<vmem>>, vector<2x512xf32>
    tpu.vector_store %arg7[%c0_33, %c0_34], %40 {strides = array<i32>} : memref<2x512xf32, #tpu.memory_space<vmem>>, vector<2x512xf32>,
    return
  }
  func.func @transform_0(%arg0: i32) -> (i32, i32) {
    %c0_i32 = arith.constant 0 : i32
    %c0_i32_0 = arith.constant 0 : i32
    %c0_i32_1 = arith.constant 0 : i32
    return %c0_i32, %c0_i32_0 : i32, i32
  }
  func.func @transform_1(%arg0: i32) -> (i32, i32, i32) {
    %c0_i32 = arith.constant 0 : i32
    %c0_i32_0 = arith.constant 0 : i32
    %c0_i32_1 = arith.constant 0 : i32
    %c0_i32_2 = arith.constant 0 : i32
    return %c0_i32, %c0_i32_0, %c0_i32_1 : i32, i32, i32
  }
  func.func @transform_2(%arg0: i32) -> (i32, i32, i32) {
    %c0_i32 = arith.constant 0 : i32
    %c0_i32_0 = arith.constant 0 : i32
    %c0_i32_1 = arith.constant 0 : i32
    %c0_i32_2 = arith.constant 0 : i32
    return %c0_i32, %c0_i32_0, %c0_i32_1 : i32, i32, i32
  }
  func.func @transform_3(%arg0: i32) -> (i32, i32) {
    %c0_i32 = arith.constant 0 : i32
    %c0_i32_0 = arith.constant 0 : i32
    %c0_i32_1 = arith.constant 0 : i32
    return %c0_i32, %c0_i32_0 : i32, i32
  }
  func.func @transform_4(%arg0: i32) -> (i32, i32) {
    %c0_i32 = arith.constant 0 : i32
    %c0_i32_0 = arith.constant 0 : i32
    %c0_i32_1 = arith.constant 0 : i32
    return %c0_i32, %c0_i32_0 : i32, i32
  }
  func.func @transform_5(%arg0: i32) -> (i32, i32) {
    %c0_i32 = arith.constant 0 : i32
    %c0_i32_0 = arith.constant 0 : i32
    return %c0_i32, %arg0 : i32, i32
  }
  func.func @transform_6(%arg0: i32) -> (i32, i32) {
    %c0_i32 = arith.constant 0 : i32
    %c0_i32_0 = arith.constant 0 : i32
    return %c0_i32, %arg0 : i32, i32
  }
}

</mosaic_0001>

<bundles_post_ra>
// kernel: tpu_custom_call.1
= control target key start
LH: loop header
LB: loop body
LE: loop exit
PB: predicated region body
PF: predicated region fallthrough
CT: control target
= control target key end

     0   :  { %11 = vsyncpa [#allocation3], 0  ;;  %s3411_s0 = inlined_call_operand.vmem [shape: f32[64,8], index: 0, kind: input, shape index: {}]   ;;  %s3412_s1 = inlined_call_operand.vmem [shape: f32[4,64,64], index: 1, kind: input, shape index: {}]   ;;  %s3413_s2 = inlined_call_operand.vmem [shape: f32[4,64,1], index: 2, kind: input, shape index: {}]   ;;  %s3414_s3 = inlined_call_operand.vmem [shape: f32[2,64], index: 3, kind: input, shape index: {}]   ;;  %s3415_s4 = inlined_call_operand.vmem [shape: f32[2,1], index: 4, kind: input, shape index: {}]   ;;  %s3416_s5 = inlined_call_operand.vmem [shape: f32[8,1024], index: 5, kind: input, shape index: {}]   ;;  %s3417_s6 = inlined_call_operand.hbm [shape: f32[2,1024], index: 6, kind: output, shape index: {}]  }
   0x1   :  { %13 = vsyncpa [#allocation3 + $0x1], 0  ;;  %s2926_s21 = smov 0   ;;  %s2928_s22 = smov 0  }
   0x2   :  { %s2930_s23 = smov 0   ;;  %s2932_s24 = smov 0  }
   0x3 LB: > { %s2947_s25 = sadd.s32 4294967295, %s2885_s24   ;;  %s2156_s26 = sadd.s32 4294967294, %s2885_s24   ;;  %s2885_s24 = sphi %s2932_s24, %s3423_s24   ;;  %s2881_s23 = sphi %s2930_s23, %s3422_s23   ;;  %s2877_s22 = sphi %s2928_s22, %s3421_s22   ;;  %s2873_s21 = sphi %s2926_s21, %s3420_s21  }
   0x4   : > { %s2951_s27 = sadd.s32 1, %s2885_s24   ;;  %s157_s28 = sadd.s32 1, %s2881_s23 }
   0x5   : > { %s154_s29 = ssub.s32 %s2885_s24, %s2951_s27  ;;  %p167_p0 = scmp.ne.s32.totalorder %s2881_s23, %s2877_s22 }
   0x6   : > { %p155_p1 = scmp.eq.s32.totalorder %s154_s29, 0  ;;  %p168_p2 = scmp.eq.s32.totalorder %s2947_s25, 1 }
   0x7   : > { %p173_p3 = scmp.ne.s32.totalorder %s2877_s22, %s2873_s21  ;;  %p174_p4 = scmp.eq.s32.totalorder %s2156_s26, 1 }
   0x8   : > { %s2962_s30 = scalar_select %p155_p1, %s2881_s23, %s157_s28  }
   0x9   : > { %p2964_p5 = por %p168_p2, %p167_p0  ;;  %p2968_p6 = por %p174_p4, %p173_p3 }
   0xa   : > { %p2159_p7 = scmp.ge.s32.totalorder %s2885_s24, 1  ;;  %p216_p8 = scmp.lt.s32.totalorder %s2885_s24, 3 }
   0xc   : > { %p217_p9 = pnand %p2159_p7, %p216_p8 }
   0xd   : > { %s2161_s9 = sshll.u32 (!%p217_p9), %s2947_s25, 2  ;;  %v2887_v0 = vmov (!%p217_p9), 0.0   ;;  %v253_v1 = vld [vmem:[%s3411_s0] sm:$0xff] (!%p217_p9)  ;;  %vm265_vm0 = vcmask (!%p217_p9), 64512   ;;  %v254_v6 = vld [vmem:[%s3411_s0 + $0x8] sm:$0xff] (!%p217_p9)  ;;  %v255_v7 = vld [vmem:[%s3411_s0 + $0x10] sm:$0xff] (!%p217_p9) }
   0xe   : > { %220 = sbr.rel (%p217_p9) target bundleno = 1567 (0x61f), region = 44  ;;  %p247_p10 = scmp.lt.s32.totalorder (!%p217_p9), %s2161_s9, 7  ;;  %354 = vmatprep.mubr.f32.mxu0 (!%p217_p9), %v2887_v0  ;;  %467 = vmatprep.mubr.f32.mxu1 (!%p217_p9), %v2887_v0  ;;  %v256_v8 = vld [vmem:[%s3411_s0 + $0x18] sm:$0xff] (!%p217_p9)  ;;  %v257_v9 = vld [vmem:[%s3411_s0 + $0x20] sm:$0xff] (!%p217_p9)  ;;  %v258_v10 = vld [vmem:[%s3411_s0 + $0x28] sm:$0xff] (!%p217_p9)  ;;  %v2888_v13 = vmov (!%p217_p9), 0  }
   0xf   : > { %v259_v11 = vld [vmem:[%s3411_s0 + $0x30] sm:$0xff] (!%p217_p9)  ;;  %v260_v12 = vld [vmem:[%s3411_s0 + $0x38] sm:$0xff] (!%p217_p9)  ;;  %2501 = vset.pattern.permute.xlu0 (!%p217_p9), %v2888_v13  ;;  %2502 = vset.pattern.permute.xlu1 (!%p217_p9), %v2888_v13  ;;  %v556_v14 = vld [vmem:[%s3413_s2] sm:$0xff] (!%p217_p9)  ;;  %vm604_vm1 = vcmask (!%p217_p9), 523264   ;;  %s243_s12 = sand.u32 (!%p217_p9), 1, %s2877_s22   ;;  %s2298_s14 = sshll.u32 (!%p217_p9), %s2947_s25, 7 }
  0x10   : > { %566 = vperm.xlu0 (!%p217_p9), %2501, %v556_v14   ;;  %v557_v15 = vld [vmem:[%s3413_s2 + $0x8] sm:$0xff] (!%p217_p9)  ;;  %v560_v16 = vld [vmem:[%s3413_s2 + $0x20] sm:$0xff] (!%p217_p9)  ;;  %v558_v17 = vld [vmem:[%s3413_s2 + $0x10] sm:$0xff] (!%p217_p9)  ;;  %s3369_s19 = scalar_lea.hbm (!%p217_p9), %s3417_s6, %s2298_s14  ;;  %s2083_s20 = scalar_lea.sflag (!%p217_p9), [#allocation3], %s243_s12 }
  0x11   : > { %576 = vperm.xlu1 (!%p217_p9), %2502, %v558_v17   ;;  %v562_v18 = vld [vmem:[%s3413_s2 + $0x30] sm:$0xff] (!%p217_p9)  ;;  %v559_v19 = vld [vmem:[%s3413_s2 + $0x18] sm:$0xff] (!%p217_p9)  ;;  %v2203_v20 = vld [vmem:[%s3413_s2 + $0x40] sm:$0xff] (!%p217_p9)  ;;  %s2890_s25 = smov (!%p217_p9), [#allocation2]  }
  0x12   : > { %v561_v21 = vld [vmem:[%s3413_s2 + $0x28] sm:$0xff] (!%p217_p9)  ;;  %v2205_v22 = vld [vmem:[%s3413_s2 + $0x50] sm:$0xff] (!%p217_p9)  ;;  %v563_v23 = vld [vmem:[%s3413_s2 + $0x38] sm:$0xff] (!%p217_p9)  ;;  %s2827_s28 = sshll.u32 (!%p217_p9), %s2890_s25, 4  ;;  %s2828_s28 = int_to_ptr.vmem [resolvable:$false] %s2827_s28 }
  0x13   : > { %v2207_v24 = vld [vmem:[%s3413_s2 + $0x60] sm:$0xff] (!%p217_p9)  ;;  %v2204_v25 = vld [vmem:[%s3413_s2 + $0x48] sm:$0xff] (!%p217_p9)  ;;  %v2209_v26 = vld [vmem:[%s3413_s2 + $0x70] sm:$0xff] (!%p217_p9)  ;;  %s2829_s29 = scalar_lea.vmem (!%p217_p9), %s2828_s28, 256 }
  0x14   : > { %571 = vperm.xlu0 (!%p217_p9), %2501, %v557_v15   ;;  %v2206_v27 = vld [vmem:[%s3413_s2 + $0x58] sm:$0xff] (!%p217_p9)  ;;  %v2235_v28 = vld [vmem:[%s3413_s2 + $0x80] sm:$0xff] (!%p217_p9)  ;;  %v2208_v29 = vld [vmem:[%s3413_s2 + $0x68] sm:$0xff] (!%p217_p9) }
  0x15   : > { %s3425_s9 = smov (!%p247_p10, %s2161_s9), 7  ;;  %581 = vperm.xlu1 %2502, %v559_v19   ;;  %v2237_v30 = vld [vmem:[%s3413_s2 + $0x90] sm:$0xff]  ;;  %v2210_v31 = vld [vmem:[%s3413_s2 + $0x78] sm:$0xff]  ;;  %v2239_v32 = vld [vmem:[%s3413_s2 + $0xa0] sm:$0xff] }
  0x16   : > { %s2162_s10 = sshll.u32 %s3425_s9, 3  ;;  %v2236_v33 = vld [vmem:[%s3413_s2 + $0x88] sm:$0xff]  ;;  %v2241_v34 = vld [vmem:[%s3413_s2 + $0xb0] sm:$0xff]  ;;  %v2238_v35 = vld [vmem:[%s3413_s2 + $0x98] sm:$0xff] }
  0x17   : > { %s250_s13 = scalar_lea.vmem %s3416_s5, %s2162_s10  ;;  %v2267_v36 = vld [vmem:[%s3413_s2 + $0xc0] sm:$0xff]  ;;  %v2240_v37 = vld [vmem:[%s3413_s2 + $0xa8] sm:$0xff]  ;;  %v2269_v38 = vld [vmem:[%s3413_s2 + $0xd0] sm:$0xff] }
  0x18   : > { %v262_v2 = vld [vmem:[%s250_s13 + $0x8] sm:$0xff]  ;;  %v264_v3 = vld [vmem:[%s250_s13 + $0x18] sm:$0xff]  ;;  %v261_v4 = vld [vmem:[%s250_s13] sm:$0xff]  ;;  %586 = vperm.xlu0 %2501, %v560_v16  }
  0x19   : > { %290 = vmatprep.subr.mxu0 %v262_v2  ;;  %403 = vmatprep.subr.mxu1 %v264_v3  ;;  %v263_v5 = vld [vmem:[%s250_s13 + $0x10] sm:$0xff]  ;;  %v2242_v39 = vld [vmem:[%s3413_s2 + $0xb8] sm:$0xff]  ;;  %v2271_v40 = vld [vmem:[%s3413_s2 + $0xe0] sm:$0xff]  ;;  %s2160_s13 = sshll.u32 %s243_s12, 3 }
  0x1a   : > { %291 = vmatpush1.msra.mxu0 %v261_v4  ;;  %404 = vmatpush1.msra.mxu1 %v263_v5  ;;  %v2268_v41 = vld [vmem:[%s3413_s2 + $0xc8] sm:$0xff]  ;;  %v2273_v42 = vld [vmem:[%s3413_s2 + $0xf0] sm:$0xff]  ;;  %v2270_v43 = vld [vmem:[%s3413_s2 + $0xd8] sm:$0xff]  ;;  %s245_s15 = scalar_lea.vmem [#allocation2], %s2160_s13 }
  0x1b   : > { %2163 = vmatmul.mubr.msk.f32.vlgmr.msra.gmra.mrb[0].mxu0 %vm265_vm0, %v253_v1  ;;  %2171 = vmatmul.mubr.msk.f32.vlgmr.msra.gmra.mrb[0].mxu1 %vm265_vm0, %v253_v1  ;;  %v1908_v48 = vld [vmem:[%s3415_s4] sm:$0x3]  ;;  %v2272_v49 = vld [vmem:[%s3413_s2 + $0xe8] sm:$0xff]  ;;  %v2274_v54 = vld [vmem:[%s3413_s2 + $0xf8] sm:$0xff]  ;;  %s2097_s16 = sshll.u32 %s245_s15, 4  ;;  %s3371_s16 = int_to_ptr.vmem [resolvable:$true] %s2097_s16 }
  0x1c   : > { %360 = vmatprep.mubr.f32.mxu0 %v2887_v0  ;;  %473 = vmatprep.mubr.f32.mxu1 %v2887_v0  ;;  %s2823_s26 = scalar_lea.vmem %s3371_s16, 128  ;;  %p2830_p0 = scmp.lt.s32.totalorder %s3371_s16, %s2828_s28 }
  0x1d   : > { %596 = vperm.xlu0 %2501, %v562_v18   ;;  %591 = vperm.xlu1 %2502, %v561_v21   ;;  %p2824_p11 = scmp.ne.s32.totalorder %s3371_s16, %s2823_s26  ;;  %p2831_p1 = scmp.lt.s32.totalorder %s2829_s29, %s2823_s26 }
  0x1f   : > { %2164 = vmatmul.mubr.msk.f32.gmra.mrb[2].mxu0 %vm265_vm0, %v254_v6  ;;  %2172 = vmatmul.mubr.msk.f32.gmra.mrb[2].mxu1 %vm265_vm0, %v254_v6  ;;  %p2825_p12 = pnand %p2824_p11, %p2964_p5  ;;  %p2832_p2 = por %p2831_p1, %p2830_p0 }
  0x20   : > { %366 = vmatprep.mubr.f32.mxu0 %v2887_v0  ;;  %479 = vmatprep.mubr.f32.mxu1 %v2887_v0 }
  0x21   : > { %907 = vperm.xlu0 %2501, %v2203_v20   ;;  %601 = vperm.xlu1 %2502, %v563_v23   ;;  %p2826_p13 = pneg %p2825_p12 }
  0x23   : > { %2165 = vmatmul.mubr.msk.f32.gmra.mrb[4].mxu0 %vm265_vm0, %v255_v7  ;;  %2173 = vmatmul.mubr.msk.f32.gmra.mrb[4].mxu1 %vm265_vm0, %v255_v7  ;;  %p2833_p3 = pnand %p2832_p2, %p2826_p13 }
  0x24   : > { %372 = vmatprep.mubr.f32.mxu0 %v2887_v0  ;;  %485 = vmatprep.mubr.f32.mxu1 %v2887_v0 }
  0x25   : > { %917 = vperm.xlu0 %2501, %v2205_v22   ;;  %912 = vperm.xlu1 %2502, %v2204_v25  }
  0x27   : > { %2166 = vmatmul.mubr.msk.f32.gmra.mrb[6].mxu0 %vm265_vm0, %v256_v8  ;;  %2174 = vmatmul.mubr.msk.f32.gmra.mrb[6].mxu1 %vm265_vm0, %v256_v8 }
  0x28   : > { %378 = vmatprep.mubr.f32.mxu0 %v2887_v0  ;;  %491 = vmatprep.mubr.f32.mxu1 %v2887_v0 }
  0x29   : > { %927 = vperm.xlu0 %2501, %v2207_v24   ;;  %922 = vperm.xlu1 %2502, %v2206_v27  }
  0x2b   : > { %2167 = vmatmul.mubr.msk.f32.gmra.mrb[8].mxu0 %vm265_vm0, %v257_v9  ;;  %2175 = vmatmul.mubr.msk.f32.gmra.mrb[8].mxu1 %vm265_vm0, %v257_v9 }
  0x2c   : > { %384 = vmatprep.mubr.f32.mxu0 %v2887_v0  ;;  %497 = vmatprep.mubr.f32.mxu1 %v2887_v0 }
  0x2d   : > { %937 = vperm.xlu0 %2501, %v2209_v26   ;;  %932 = vperm.xlu1 %2502, %v2208_v29  }
  0x2f   : > { %2168 = vmatmul.mubr.msk.f32.gmra.mrb[10].mxu0 %vm265_vm0, %v258_v10  ;;  %2176 = vmatmul.mubr.msk.f32.gmra.mrb[10].mxu1 %vm265_vm0, %v258_v10 }
  0x30   : > { %390 = vmatprep.mubr.f32.mxu0 %v2887_v0  ;;  %503 = vmatprep.mubr.f32.mxu1 %v2887_v0 }
  0x31   : > { %1247 = vperm.xlu0 %2501, %v2235_v28   ;;  %942 = vperm.xlu1 %2502, %v2210_v31  }
  0x33   : > { %2169 = vmatmul.mubr.msk.f32.gmra.mrb[12].mxu0 %vm265_vm0, %v259_v11  ;;  %2177 = vmatmul.mubr.msk.f32.gmra.mrb[12].mxu1 %vm265_vm0, %v259_v11 }
  0x34   : > { %396 = vmatprep.mubr.f32.mxu0 %v2887_v0  ;;  %509 = vmatprep.mubr.f32.mxu1 %v2887_v0 }
  0x35   : > { %1257 = vperm.xlu0 %2501, %v2237_v30   ;;  %1252 = vperm.xlu1 %2502, %v2236_v33  }
  0x37   : > { %2170 = vmatmul.mubr.msk.f32.gmra.mrb[14].mxu0 %vm265_vm0, %v260_v12  ;;  %2178 = vmatmul.mubr.msk.f32.gmra.mrb[14].mxu1 %vm265_vm0, %v260_v12 }
  0x38   : > { %693 = vmatprep.mubr.f32.mxu0 %v2887_v0  ;;  %806 = vmatprep.mubr.f32.mxu1 %v2887_v0 }
  0x39   : > { %1267 = vperm.xlu0 %2501, %v2239_v32   ;;  %1262 = vperm.xlu1 %2502, %v2238_v35  }
  0x3d   : > { %1277 = vperm.xlu0 %2501, %v2241_v34   ;;  %1272 = vperm.xlu1 %2502, %v2240_v37  }
  0x41   : > { %1587 = vperm.xlu0 %2501, %v2267_v36   ;;  %1282 = vperm.xlu1 %2502, %v2242_v39  }
  0x45   : > { %1597 = vperm.xlu0 %2501, %v2269_v38   ;;  %1592 = vperm.xlu1 %2502, %v2268_v41  }
  0x49   : > { %1607 = vperm.xlu0 %2501, %v2271_v40   ;;  %1602 = vperm.xlu1 %2502, %v2270_v43  }
  0x4d   : > { %1617 = vperm.xlu0 %2501, %v2273_v42   ;;  %1612 = vperm.xlu1 %2502, %v2272_v49  }
  0x51   : > { %1911 = vperm.xlu0 %2501, %v1908_v48   ;;  %1622 = vperm.xlu1 %2502, %v2274_v54  }
  0xee   : > { %v356_v44 = vpop.f32.mrb[0].mxu0  ;;  %v469_v45 = vpop.f32.mrb[0].mxu1 }
  0xef   : > { %2503 = vtanh.f32 %v356_v44  ;;  %v358_v46 = vpop.f32.mrb[1].mxu0  ;;  %v471_v47 = vpop.f32.mrb[1].mxu1 }
  0xf0   : > { %2505 = vtanh.f32 %v469_v45 }
  0xf1   : > { %2507 = vtanh.f32 %v358_v46 }
  0xf2   : > { %2509 = vtanh.f32 %v471_v47  ;;  %v362_v50 = vpop.f32.mrb[2].mxu0  ;;  %v475_v51 = vpop.f32.mrb[2].mxu1 }
  0xf3   : > { %2511 = vtanh.f32 %v362_v50  ;;  %v364_v52 = vpop.f32.mrb[3].mxu0  ;;  %v477_v53 = vpop.f32.mrb[3].mxu1 }
  0xf4   : > { %2513 = vtanh.f32 %v475_v51 }
  0xf5   : > { %2515 = vtanh.f32 %v364_v52 }
  0xf6   : > { %2517 = vtanh.f32 %v477_v53  ;;  %v368_v55 = vpop.f32.mrb[4].mxu0  ;;  %v481_v56 = vpop.f32.mrb[4].mxu1 }
  0xf7   : > { %2519 = vtanh.f32 %v368_v55  ;;  %v370_v57 = vpop.f32.mrb[5].mxu0  ;;  %v483_v58 = vpop.f32.mrb[5].mxu1 }
  0xf8   : > { %2521 = vtanh.f32 %v481_v56 }
  0xf9   : > { %v2504_v59 = vpop.eup %2503  ;;  %2523 = vtanh.f32 %v370_v57 }
  0xfa   : > { %v2506_v60 = vpop.eup %2505  ;;  %2525 = vtanh.f32 %v483_v58  ;;  %v374_v61 = vpop.f32.mrb[6].mxu0 }
  0xfb   : > { %v487_v62 = vpop.f32.mrb[6].mxu1  ;;  %v2508_v63 = vpop.eup %2507  ;;  %2527 = vtanh.f32 %v374_v61 }
  0xfc   : > { %v376_v1 = vpop.f32.mrb[7].mxu0  ;;  %v489_v2 = vpop.f32.mrb[7].mxu1  ;;  %2529 = vtanh.f32 %v487_v62 }
  0xfd   : > { %v2510_v3 = vpop.eup %2509  ;;  %2531 = vtanh.f32 %v376_v1  ;;  %v548_v1 = vld [vmem:[%s3412_s1] sm:$0xff] }
  0xfe   : > { %v2512_v4 = vpop.eup %2511  ;;  %2533 = vtanh.f32 %v489_v2  ;;  %v380_v6 = vpop.f32.mrb[8].mxu0  ;;  %v549_v2 = vld [vmem:[%s3412_s1 + $0x8] sm:$0xff] }
  0xff   : > { %v2514_v5 = vpop.eup %2513  ;;  %v493_v7 = vpop.f32.mrb[8].mxu1  ;;  %v2301_v8 = vpack.c.bf16 %v2512_v4, %v2504_v59  ;;  %2535 = vtanh.f32 %v380_v6  ;;  %v551_v4 = vld [vmem:[%s3412_s1 + $0x18] sm:$0xff]  ;;  %v553_v6 = vld [vmem:[%s3412_s1 + $0x28] sm:$0xff] }
 0x100   : > { %v2516_v9 = vpop.eup %2515  ;;  %v382_v10 = vpop.f32.mrb[9].mxu0  ;;  %v2317_v12 = vpack.c.bf16 %v2514_v5, %v2506_v60  ;;  %2537 = vtanh.f32 %v493_v7  ;;  %v552_v5 = vld [vmem:[%s3412_s1 + $0x20] sm:$0xff]  ;;  %v554_v7 = vld [vmem:[%s3412_s1 + $0x30] sm:$0xff] }
 0x101   : > { %v495_v11 = vpop.f32.mrb[9].mxu1  ;;  %v2518_v13 = vpop.eup %2517  ;;  %v2299_v14 = vpack.c.bf16 %v2516_v9, %v2508_v63  ;;  %2539 = vtanh.f32 %v382_v10 }
 0x102   : > { %v2520_v15 = vpop.eup %2519  ;;  %v2315_v16 = vpack.c.bf16 %v2518_v13, %v2510_v3  ;;  %2541 = vtanh.f32 %v495_v11  ;;  %v386_v18 = vpop.f32.mrb[10].mxu0  ;;  %v550_v3 = vld [vmem:[%s3412_s1 + $0x10] sm:$0xff] }
 0x103   : > { %v2522_v17 = vpop.eup %2521  ;;  %2300 = vmatprep.subr.bf16.mxu0 %v2299_v14  ;;  %v499_v19 = vpop.f32.mrb[10].mxu1  ;;  %2543 = vtanh.f32 %v386_v18 }
 0x104   : > { %v2524_v20 = vpop.eup %2523  ;;  %2316 = vmatprep.subr.bf16.mxu1 %v2315_v16  ;;  %2302 = vmatpush1.bf16.msra.mxu0 %v2301_v8  ;;  %v388_v21 = vpop.f32.mrb[11].mxu0  ;;  %2545 = vtanh.f32 %v499_v19  ;;  %v555_v8 = vld [vmem:[%s3412_s1 + $0x38] sm:$0xff] }
 0x105   : > { %v501_v22 = vpop.f32.mrb[11].mxu1  ;;  %v2526_v23 = vpop.eup %2525  ;;  %2318 = vmatpush1.bf16.msra.mxu1 %v2317_v12  ;;  %2547 = vtanh.f32 %v388_v21 }
 0x106   : > { %v2528_v24 = vpop.eup %2527  ;;  %2549 = vtanh.f32 %v501_v22  ;;  %v392_v26 = vpop.f32.mrb[12].mxu0 }
 0x107   : > { %v2530_v25 = vpop.eup %2529  ;;  %v505_v27 = vpop.f32.mrb[12].mxu1  ;;  %v2305_v28 = vpack.c.bf16 %v2528_v24, %v2520_v15  ;;  %2551 = vtanh.f32 %v392_v26 }
 0x108   : > { %v2532_v29 = vpop.eup %2531  ;;  %v394_v30 = vpop.f32.mrb[13].mxu0  ;;  %v2321_v32 = vpack.c.bf16 %v2530_v25, %v2522_v17  ;;  %2553 = vtanh.f32 %v505_v27 }
 0x109   : > { %v507_v31 = vpop.f32.mrb[13].mxu1  ;;  %v2534_v33 = vpop.eup %2533  ;;  %v2303_v34 = vpack.c.bf16 %v2532_v29, %v2524_v20  ;;  %2555 = vtanh.f32 %v394_v30 }
 0x10a   : > { %v2536_v35 = vpop.eup %2535  ;;  %v2319_v36 = vpack.c.bf16 %v2534_v33, %v2526_v23  ;;  %2557 = vtanh.f32 %v507_v31  ;;  %v398_v38 = vpop.f32.mrb[14].mxu0 }
 0x10b   : > { %v2538_v37 = vpop.eup %2537  ;;  %2304 = vmatprep.subr.bf16.mxu0 %v2303_v34  ;;  %v511_v39 = vpop.f32.mrb[14].mxu1  ;;  %2559 = vtanh.f32 %v398_v38 }
 0x10c   : > { %v2540_v40 = vpop.eup %2539  ;;  %2320 = vmatprep.subr.bf16.mxu1 %v2319_v36  ;;  %2306 = vmatpush1.bf16.msra.mxu0 %v2305_v28  ;;  %v400_v41 = vpop.f32.mrb[15].mxu0  ;;  %2561 = vtanh.f32 %v511_v39 }
 0x10d   : > { %v513_v42 = vpop.f32.mrb[15].mxu1  ;;  %v2542_v43 = vpop.eup %2541  ;;  %2322 = vmatpush1.bf16.msra.mxu1 %v2321_v32  ;;  %2563 = vtanh.f32 %v400_v41 }
 0x10e   : > { %v2544_v44 = vpop.eup %2543  ;;  %2565 = vtanh.f32 %v513_v42  ;;  %v567_v9 = vpop.permute.xlu0 %566 }
 0x10f   : > { %v2546_v45 = vpop.eup %2545  ;;  %v2309_v46 = vpack.c.bf16 %v2544_v44, %v2536_v35  ;;  %v577_v23 = vpop.permute.xlu1 %576 }
 0x110   : > { %v2548_v47 = vpop.eup %2547  ;;  %v2325_v48 = vpack.c.bf16 %v2546_v45, %v2538_v37 }
 0x111   : > { %v2550_v49 = vpop.eup %2549  ;;  %v2307_v50 = vpack.c.bf16 %v2548_v47, %v2540_v40 }
 0x112   : > { %v2552_v51 = vpop.eup %2551  ;;  %v2323_v52 = vpack.c.bf16 %v2550_v49, %v2542_v43  ;;  %v572_v18 = vpop.permute.xlu0 %571 }
 0x113   : > { %v2554_v53 = vpop.eup %2553  ;;  %2308 = vmatprep.subr.bf16.mxu0 %v2307_v50  ;;  %v582_v36 = vpop.permute.xlu1 %581 }
 0x114   : > { %v2556_v54 = vpop.eup %2555  ;;  %2324 = vmatprep.subr.bf16.mxu1 %v2323_v52  ;;  %2310 = vmatpush1.bf16.msra.mxu0 %v2309_v46 }
 0x115   : > { %v2558_v55 = vpop.eup %2557  ;;  %2326 = vmatpush1.bf16.msra.mxu1 %v2325_v48 }
 0x116   : > { %v2560_v56 = vpop.eup %2559  ;;  %v587_v49 = vpop.permute.xlu0 %586 }
 0x117   : > { %v2562_v57 = vpop.eup %2561  ;;  %v2313_v58 = vpack.c.bf16 %v2560_v56, %v2552_v51 }
 0x118   : > { %v2564_v59 = vpop.eup %2563  ;;  %v2329_v60 = vpack.c.bf16 %v2562_v57, %v2554_v53 }
 0x119   : > { %v2566_v61 = vpop.eup %2565  ;;  %v2311_v62 = vpack.c.bf16 %v2564_v59, %v2556_v54 }
 0x11a   : > { %v2327_v63 = vpack.c.bf16 %v2566_v61, %v2558_v55 }
 0x11b   : > { %2312 = vmatprep.subr.bf16.mxu0 %v2311_v62 }
 0x11c   : > { %2328 = vmatprep.subr.bf16.mxu1 %v2327_v63  ;;  %2314 = vmatpush1.bf16.msra.mxu0 %v2313_v58 }
 0x11d   : > { %2330 = vmatpush1.bf16.msra.mxu1 %v2329_v60 }
 0x11f   : > { %2179 = vmatmul.mubr.msk.f32.vlgmr.msra.gmra.mrb[16].mxu0 %vm604_vm1, %v548_v1 }
 0x120   : > { %2187 = vmatmul.mubr.msk.f32.vlgmr.msra.gmra.mrb[16].mxu1 %vm604_vm1, %v548_v1  ;;  %699 = vmatprep.mubr.f32.mxu0 %v2887_v0  ;;  %v592_v1 = vpop.permute.xlu1 %591 }
 0x121   : > { %812 = vmatprep.mubr.f32.mxu1 %v2887_v0 }
 0x123   : > { %2180 = vmatmul.mubr.msk.f32.gmra.mrb[18].mxu0 %vm604_vm1, %v549_v2 }
 0x124   : > { %2188 = vmatmul.mubr.msk.f32.gmra.mrb[18].mxu1 %vm604_vm1, %v549_v2  ;;  %705 = vmatprep.mubr.f32.mxu0 %v2887_v0 }
 0x125   : > { %818 = vmatprep.mubr.f32.mxu1 %v2887_v0 }
 0x127   : > { %2181 = vmatmul.mubr.msk.f32.gmra.mrb[20].mxu0 %vm604_vm1, %v550_v3 }
 0x128   : > { %2189 = vmatmul.mubr.msk.f32.gmra.mrb[20].mxu1 %vm604_vm1, %v550_v3  ;;  %711 = vmatprep.mubr.f32.mxu0 %v2887_v0 }
 0x129   : > { %824 = vmatprep.mubr.f32.mxu1 %v2887_v0 }
 0x12b   : > { %2182 = vmatmul.mubr.msk.f32.gmra.mrb[22].mxu0 %vm604_vm1, %v551_v4 }
 0x12c   : > { %2190 = vmatmul.mubr.msk.f32.gmra.mrb[22].mxu1 %vm604_vm1, %v551_v4  ;;  %717 = vmatprep.mubr.f32.mxu0 %v2887_v0 }
 0x12d   : > { %830 = vmatprep.mubr.f32.mxu1 %v2887_v0 }
 0x12f   : > { %2183 = vmatmul.mubr.msk.f32.gmra.mrb[24].mxu0 %vm604_vm1, %v552_v5 }
 0x130   : > { %2191 = vmatmul.mubr.msk.f32.gmra.mrb[24].mxu1 %vm604_vm1, %v552_v5  ;;  %723 = vmatprep.mubr.f32.mxu0 %v2887_v0 }
 0x131   : > { %836 = vmatprep.mubr.f32.mxu1 %v2887_v0 }
 0x133   : > { %2184 = vmatmul.mubr.msk.f32.gmra.mrb[26].mxu0 %vm604_vm1, %v553_v6 }
 0x134   : > { %2192 = vmatmul.mubr.msk.f32.gmra.mrb[26].mxu1 %vm604_vm1, %v553_v6  ;;  %729 = vmatprep.mubr.f32.mxu0 %v2887_v0 }
 0x135   : > { %842 = vmatprep.mubr.f32.mxu1 %v2887_v0 }
 0x137   : > { %2185 = vmatmul.mubr.msk.f32.gmra.mrb[28].mxu0 %vm604_vm1, %v554_v7 }
 0x138   : > { %2193 = vmatmul.mubr.msk.f32.gmra.mrb[28].mxu1 %vm604_vm1, %v554_v7  ;;  %735 = vmatprep.mubr.f32.mxu0 %v2887_v0 }
 0x139   : > { %848 = vmatprep.mubr.f32.mxu1 %v2887_v0 }
 0x13b   : > { %2186 = vmatmul.mubr.msk.f32.gmra.mrb[30].mxu0 %vm604_vm1, %v555_v8 }
 0x13c   : > { %2194 = vmatmul.mubr.msk.f32.gmra.mrb[30].mxu1 %vm604_vm1, %v555_v8  ;;  %1033 = vmatprep.mubr.f32.mxu0 %v2887_v0 }
 0x13d   : > { %1146 = vmatprep.mubr.f32.mxu1 %v2887_v0 }
 0x1f2   : > { %v695_v10 = vpop.f32.mrb[16].mxu0 }
 0x1f3   : > { %v696_v11 = vadd.f32 %v695_v10, %v567_v9  ;;  %v808_v12 = vpop.f32.mrb[16].mxu1  ;;  %v697_v13 = vpop.f32.mrb[17].mxu0 }
 0x1f4   : > { %v809_v14 = vadd.f32 %v808_v12, %v567_v9  ;;  %v698_v15 = vadd.f32 %v697_v13, %v567_v9  ;;  %v810_v16 = vpop.f32.mrb[17].mxu1 }
 0x1f5   : > { %2567 = vtanh.f32 %v696_v11  ;;  %v811_v17 = vadd.f32 %v810_v16, %v567_v9  ;;  %v597_v16 = vpop.permute.xlu0 %596 }
 0x1f6   : > { %2569 = vtanh.f32 %v809_v14  ;;  %v701_v19 = vpop.f32.mrb[18].mxu0 }
 0x1f7   : > { %2571 = vtanh.f32 %v698_v15  ;;  %v702_v20 = vadd.f32 %v701_v19, %v572_v18  ;;  %v814_v21 = vpop.f32.mrb[18].mxu1  ;;  %v703_v22 = vpop.f32.mrb[19].mxu0 }
 0x1f8   : > { %2573 = vtanh.f32 %v811_v17  ;;  %v815_v24 = vadd.f32 %v814_v21, %v572_v18  ;;  %v704_v25 = vadd.f32 %v703_v22, %v572_v18  ;;  %v816_v26 = vpop.f32.mrb[19].mxu1 }
 0x1f9   : > { %2575 = vtanh.f32 %v702_v20  ;;  %v817_v27 = vadd.f32 %v816_v26, %v572_v18 }
 0x1fa   : > { %2577 = vtanh.f32 %v815_v24  ;;  %v707_v28 = vpop.f32.mrb[20].mxu0 }
 0x1fb   : > { %2579 = vtanh.f32 %v704_v25  ;;  %v708_v29 = vadd.f32 %v707_v28, %v577_v23  ;;  %v820_v30 = vpop.f32.mrb[20].mxu1  ;;  %v709_v31 = vpop.f32.mrb[21].mxu0 }
 0x1fc   : > { %2581 = vtanh.f32 %v817_v27  ;;  %v821_v32 = vadd.f32 %v820_v30, %v577_v23  ;;  %v710_v33 = vadd.f32 %v709_v31, %v577_v23  ;;  %v822_v34 = vpop.f32.mrb[21].mxu1  ;;  %v602_v31 = vpop.permute.xlu1 %601 }
 0x1fd   : > { %2583 = vtanh.f32 %v708_v29  ;;  %v823_v35 = vadd.f32 %v822_v34, %v577_v23 }
 0x1fe   : > { %2585 = vtanh.f32 %v821_v32  ;;  %v713_v37 = vpop.f32.mrb[22].mxu0 }
 0x1ff   : > { %v2568_v38 = vpop.eup %2567  ;;  %2587 = vtanh.f32 %v710_v33  ;;  %v714_v39 = vadd.f32 %v713_v37, %v582_v36  ;;  %v826_v40 = vpop.f32.mrb[22].mxu1 }
 0x200   : > { %v715_v41 = vpop.f32.mrb[23].mxu0  ;;  %v2570_v42 = vpop.eup %2569  ;;  %2589 = vtanh.f32 %v823_v35  ;;  %v827_v43 = vadd.f32 %v826_v40, %v582_v36 }
 0x201   : > { %v716_v44 = vadd.f32 %v715_v41, %v582_v36  ;;  %v828_v45 = vpop.f32.mrb[23].mxu1  ;;  %v2572_v46 = vpop.eup %2571  ;;  %2591 = vtanh.f32 %v714_v39 }
 0x202   : > { %v829_v47 = vadd.f32 %v828_v45, %v582_v36  ;;  %v2574_v48 = vpop.eup %2573  ;;  %2593 = vtanh.f32 %v827_v43  ;;  %v719_v50 = vpop.f32.mrb[24].mxu0 }
 0x203   : > { %v2576_v51 = vpop.eup %2575  ;;  %2595 = vtanh.f32 %v716_v44  ;;  %v720_v52 = vadd.f32 %v719_v50, %v587_v49  ;;  %v832_v53 = vpop.f32.mrb[24].mxu1 }
 0x204   : > { %v721_v54 = vpop.f32.mrb[25].mxu0  ;;  %v2578_v55 = vpop.eup %2577  ;;  %2597 = vtanh.f32 %v829_v47  ;;  %v833_v56 = vadd.f32 %v832_v53, %v587_v49  ;;  %v2333_v59 = vpack.c.bf16 %v2576_v51, %v2568_v38 }
 0x205   : > { %v722_v57 = vadd.f32 %v721_v54, %v587_v49  ;;  %v834_v58 = vpop.f32.mrb[25].mxu1  ;;  %v2580_v60 = vpop.eup %2579  ;;  %2599 = vtanh.f32 %v720_v52  ;;  %v2349_v62 = vpack.c.bf16 %v2578_v55, %v2570_v42 }
 0x206   : > { %v835_v61 = vadd.f32 %v834_v58, %v587_v49  ;;  %v2582_v63 = vpop.eup %2581  ;;  %2601 = vtanh.f32 %v833_v56  ;;  %v725_v2 = vpop.f32.mrb[26].mxu0  ;;  %v2331_v3 = vpack.c.bf16 %v2580_v60, %v2572_v46 }
 0x207   : > { %v2584_v4 = vpop.eup %2583  ;;  %2603 = vtanh.f32 %v722_v57  ;;  %v726_v5 = vadd.f32 %v725_v2, %v592_v1  ;;  %v838_v6 = vpop.f32.mrb[26].mxu1  ;;  %v2347_v8 = vpack.c.bf16 %v2582_v63, %v2574_v48 }
 0x208   : > { %v727_v7 = vpop.f32.mrb[27].mxu0  ;;  %v2586_v9 = vpop.eup %2585  ;;  %2605 = vtanh.f32 %v835_v61  ;;  %v839_v10 = vadd.f32 %v838_v6, %v592_v1  ;;  %2332 = vmatprep.subr.bf16.mxu0 %v2331_v3  ;;  %v2195_v3 = vld [vmem:[%s3412_s1 + $0x40] sm:$0xff]  ;;  %v2198_v6 = vld [vmem:[%s3412_s1 + $0x58] sm:$0xff] }
 0x209   : > { %v728_v11 = vadd.f32 %v727_v7, %v592_v1  ;;  %v840_v12 = vpop.f32.mrb[27].mxu1  ;;  %v2588_v13 = vpop.eup %2587  ;;  %2607 = vtanh.f32 %v726_v5  ;;  %2348 = vmatprep.subr.bf16.mxu1 %v2347_v8  ;;  %2334 = vmatpush1.bf16.msra.mxu0 %v2333_v59  ;;  %v2197_v5 = vld [vmem:[%s3412_s1 + $0x50] sm:$0xff]  ;;  %v2199_v7 = vld [vmem:[%s3412_s1 + $0x60] sm:$0xff]  ;;  %v2200_v8 = vld [vmem:[%s3412_s1 + $0x68] sm:$0xff] }
 0x20a   : > { %v841_v14 = vadd.f32 %v840_v12, %v592_v1  ;;  %v2590_v15 = vpop.eup %2589  ;;  %2609 = vtanh.f32 %v839_v10  ;;  %2350 = vmatpush1.bf16.msra.mxu1 %v2349_v62  ;;  %v731_v17 = vpop.f32.mrb[28].mxu0  ;;  %v2202_v10 = vld [vmem:[%s3412_s1 + $0x78] sm:$0xff] }
 0x20b   : > { %v2592_v18 = vpop.eup %2591  ;;  %2611 = vtanh.f32 %v728_v11  ;;  %v732_v19 = vadd.f32 %v731_v17, %v597_v16  ;;  %v844_v20 = vpop.f32.mrb[28].mxu1 }
 0x20c   : > { %v733_v21 = vpop.f32.mrb[29].mxu0  ;;  %v2594_v22 = vpop.eup %2593  ;;  %2613 = vtanh.f32 %v841_v14  ;;  %v845_v23 = vadd.f32 %v844_v20, %v597_v16  ;;  %v2337_v26 = vpack.c.bf16 %v2592_v18, %v2584_v4  ;;  %v2196_v4 = vld [vmem:[%s3412_s1 + $0x48] sm:$0xff] }
 0x20d   : > { %v734_v24 = vadd.f32 %v733_v21, %v597_v16  ;;  %v846_v25 = vpop.f32.mrb[29].mxu1  ;;  %v2596_v27 = vpop.eup %2595  ;;  %2615 = vtanh.f32 %v732_v19  ;;  %v2353_v29 = vpack.c.bf16 %v2594_v22, %v2586_v9  ;;  %v2201_v9 = vld [vmem:[%s3412_s1 + $0x70] sm:$0xff] }
 0x20e   : > { %v847_v28 = vadd.f32 %v846_v25, %v597_v16  ;;  %v2598_v30 = vpop.eup %2597  ;;  %2617 = vtanh.f32 %v845_v23  ;;  %v737_v32 = vpop.f32.mrb[30].mxu0  ;;  %v2335_v33 = vpack.c.bf16 %v2596_v27, %v2588_v13 }
 0x20f   : > { %v2600_v34 = vpop.eup %2599  ;;  %2619 = vtanh.f32 %v734_v24  ;;  %v738_v35 = vadd.f32 %v737_v32, %v602_v31  ;;  %v850_v36 = vpop.f32.mrb[30].mxu1  ;;  %v2351_v38 = vpack.c.bf16 %v2598_v30, %v2590_v15 }
 0x210   : > { %v739_v37 = vpop.f32.mrb[31].mxu0  ;;  %v2602_v39 = vpop.eup %2601  ;;  %2621 = vtanh.f32 %v847_v28  ;;  %v851_v40 = vadd.f32 %v850_v36, %v602_v31  ;;  %2336 = vmatprep.subr.bf16.mxu0 %v2335_v33 }
 0x211   : > { %v740_v41 = vadd.f32 %v739_v37, %v602_v31  ;;  %v852_v42 = vpop.f32.mrb[31].mxu1  ;;  %v2604_v43 = vpop.eup %2603  ;;  %2623 = vtanh.f32 %v738_v35  ;;  %2352 = vmatprep.subr.bf16.mxu1 %v2351_v38  ;;  %2338 = vmatpush1.bf16.msra.mxu0 %v2337_v26 }
 0x212   : > { %v853_v44 = vadd.f32 %v852_v42, %v602_v31  ;;  %v2606_v45 = vpop.eup %2605  ;;  %2625 = vtanh.f32 %v851_v40  ;;  %2354 = vmatpush1.bf16.msra.mxu1 %v2353_v29  ;;  %v908_v11 = vpop.permute.xlu0 %907 }
 0x213   : > { %v2608_v46 = vpop.eup %2607  ;;  %2627 = vtanh.f32 %v740_v41  ;;  %v913_v20 = vpop.permute.xlu1 %912 }
 0x214   : > { %v2610_v47 = vpop.eup %2609  ;;  %2629 = vtanh.f32 %v853_v44  ;;  %v2341_v48 = vpack.c.bf16 %v2608_v46, %v2600_v34 }
 0x215   : > { %v2612_v49 = vpop.eup %2611  ;;  %v2357_v50 = vpack.c.bf16 %v2610_v47, %v2602_v39 }
 0x216   : > { %v2614_v51 = vpop.eup %2613  ;;  %v2339_v52 = vpack.c.bf16 %v2612_v49, %v2604_v43  ;;  %v918_v29 = vpop.permute.xlu0 %917 }
 0x217   : > { %v2616_v53 = vpop.eup %2615  ;;  %v2355_v54 = vpack.c.bf16 %v2614_v51, %v2606_v45  ;;  %v923_v38 = vpop.permute.xlu1 %922 }
 0x218   : > { %v2618_v55 = vpop.eup %2617  ;;  %2340 = vmatprep.subr.bf16.mxu0 %v2339_v52 }
 0x219   : > { %v2620_v56 = vpop.eup %2619  ;;  %2356 = vmatprep.subr.bf16.mxu1 %v2355_v54  ;;  %2342 = vmatpush1.bf16.msra.mxu0 %v2341_v48 }
 0x21a   : > { %v2622_v57 = vpop.eup %2621  ;;  %2358 = vmatpush1.bf16.msra.mxu1 %v2357_v50  ;;  %v928_v51 = vpop.permute.xlu0 %927 }
 0x21b   : > { %v2624_v58 = vpop.eup %2623 }
 0x21c   : > { %v2626_v59 = vpop.eup %2625  ;;  %v2345_v60 = vpack.c.bf16 %v2624_v58, %v2616_v53 }
 0x21d   : > { %v2628_v61 = vpop.eup %2627  ;;  %v2361_v62 = vpack.c.bf16 %v2626_v59, %v2618_v55 }
 0x21e   : > { %v2630_v63 = vpop.eup %2629  ;;  %v2343_v1 = vpack.c.bf16 %v2628_v61, %v2620_v56 }
 0x21f   : > { %v2359_v2 = vpack.c.bf16 %v2630_v63, %v2622_v57 }
 0x220   : > { %2344 = vmatprep.subr.bf16.mxu0 %v2343_v1 }
 0x221   : > { %2360 = vmatprep.subr.bf16.mxu1 %v2359_v2  ;;  %2346 = vmatpush1.bf16.msra.mxu0 %v2345_v60 }
 0x222   : > { %2362 = vmatpush1.bf16.msra.mxu1 %v2361_v62 }
 0x224   : > { %2211 = vmatmul.mubr.msk.f32.vlgmr.msra.gmra.mrb[32].mxu0 %vm604_vm1, %v2195_v3 }
 0x225   : > { %2219 = vmatmul.mubr.msk.f32.vlgmr.msra.gmra.mrb[32].mxu1 %vm604_vm1, %v2195_v3  ;;  %1039 = vmatprep.mubr.f32.mxu0 %v2887_v0  ;;  %v933_v3 = vpop.permute.xlu1 %932 }
 0x226   : > { %1152 = vmatprep.mubr.f32.mxu1 %v2887_v0 }
 0x228   : > { %2212 = vmatmul.mubr.msk.f32.gmra.mrb[34].mxu0 %vm604_vm1, %v2196_v4 }
 0x229   : > { %2220 = vmatmul.mubr.msk.f32.gmra.mrb[34].mxu1 %vm604_vm1, %v2196_v4  ;;  %1045 = vmatprep.mubr.f32.mxu0 %v2887_v0 }
 0x22a   : > { %1158 = vmatprep.mubr.f32.mxu1 %v2887_v0 }
 0x22c   : > { %2213 = vmatmul.mubr.msk.f32.gmra.mrb[36].mxu0 %vm604_vm1, %v2197_v5 }
 0x22d   : > { %2221 = vmatmul.mubr.msk.f32.gmra.mrb[36].mxu1 %vm604_vm1, %v2197_v5  ;;  %1051 = vmatprep.mubr.f32.mxu0 %v2887_v0 }
 0x22e   : > { %1164 = vmatprep.mubr.f32.mxu1 %v2887_v0 }
 0x230   : > { %2214 = vmatmul.mubr.msk.f32.gmra.mrb[38].mxu0 %vm604_vm1, %v2198_v6 }
 0x231   : > { %2222 = vmatmul.mubr.msk.f32.gmra.mrb[38].mxu1 %vm604_vm1, %v2198_v6  ;;  %1057 = vmatprep.mubr.f32.mxu0 %v2887_v0 }
 0x232   : > { %1170 = vmatprep.mubr.f32.mxu1 %v2887_v0 }
 0x234   : > { %2215 = vmatmul.mubr.msk.f32.gmra.mrb[40].mxu0 %vm604_vm1, %v2199_v7 }
 0x235   : > { %2223 = vmatmul.mubr.msk.f32.gmra.mrb[40].mxu1 %vm604_vm1, %v2199_v7  ;;  %1063 = vmatprep.mubr.f32.mxu0 %v2887_v0 }
 0x236   : > { %1176 = vmatprep.mubr.f32.mxu1 %v2887_v0 }
 0x238   : > { %2216 = vmatmul.mubr.msk.f32.gmra.mrb[42].mxu0 %vm604_vm1, %v2200_v8 }
 0x239   : > { %2224 = vmatmul.mubr.msk.f32.gmra.mrb[42].mxu1 %vm604_vm1, %v2200_v8  ;;  %1069 = vmatprep.mubr.f32.mxu0 %v2887_v0 }
 0x23a   : > { %1182 = vmatprep.mubr.f32.mxu1 %v2887_v0 }
 0x23c   : > { %2217 = vmatmul.mubr.msk.f32.gmra.mrb[44].mxu0 %vm604_vm1, %v2201_v9 }
 0x23d   : > { %2225 = vmatmul.mubr.msk.f32.gmra.mrb[44].mxu1 %vm604_vm1, %v2201_v9  ;;  %1075 = vmatprep.mubr.f32.mxu0 %v2887_v0 }
 0x23e   : > { %1188 = vmatprep.mubr.f32.mxu1 %v2887_v0 }
 0x240   : > { %2218 = vmatmul.mubr.msk.f32.gmra.mrb[46].mxu0 %vm604_vm1, %v2202_v10 }
 0x241   : > { %2226 = vmatmul.mubr.msk.f32.gmra.mrb[46].mxu1 %vm604_vm1, %v2202_v10  ;;  %1373 = vmatprep.mubr.f32.mxu0 %v2887_v0 }
 0x242   : > { %1486 = vmatprep.mubr.f32.mxu1 %v2887_v0 }
 0x2f7   : > { %v1035_v12 = vpop.f32.mrb[32].mxu0 }
 0x2f8   : > { %v1036_v13 = vadd.f32 %v1035_v12, %v908_v11  ;;  %v1148_v14 = vpop.f32.mrb[32].mxu1  ;;  %v1037_v15 = vpop.f32.mrb[33].mxu0 }
 0x2f9   : > { %v1149_v16 = vadd.f32 %v1148_v14, %v908_v11  ;;  %v1038_v17 = vadd.f32 %v1037_v15, %v908_v11  ;;  %v1150_v18 = vpop.f32.mrb[33].mxu1 }
 0x2fa   : > { %2631 = vtanh.f32 %v1036_v13  ;;  %v1151_v19 = vadd.f32 %v1150_v18, %v908_v11  ;;  %v938_v18 = vpop.permute.xlu0 %937 }
 0x2fb   : > { %2633 = vtanh.f32 %v1149_v16  ;;  %v1041_v21 = vpop.f32.mrb[34].mxu0 }
 0x2fc   : > { %2635 = vtanh.f32 %v1038_v17  ;;  %v1042_v22 = vadd.f32 %v1041_v21, %v913_v20  ;;  %v1154_v23 = vpop.f32.mrb[34].mxu1  ;;  %v1043_v24 = vpop.f32.mrb[35].mxu0 }
 0x2fd   : > { %2637 = vtanh.f32 %v1151_v19  ;;  %v1155_v25 = vadd.f32 %v1154_v23, %v913_v20  ;;  %v1044_v26 = vadd.f32 %v1043_v24, %v913_v20  ;;  %v1156_v27 = vpop.f32.mrb[35].mxu1 }
 0x2fe   : > { %2639 = vtanh.f32 %v1042_v22  ;;  %v1157_v28 = vadd.f32 %v1156_v27, %v913_v20 }
 0x2ff   : > { %2641 = vtanh.f32 %v1155_v25  ;;  %v1047_v30 = vpop.f32.mrb[36].mxu0 }
 0x300   : > { %2643 = vtanh.f32 %v1044_v26  ;;  %v1048_v31 = vadd.f32 %v1047_v30, %v918_v29  ;;  %v1160_v32 = vpop.f32.mrb[36].mxu1  ;;  %v1049_v33 = vpop.f32.mrb[37].mxu0 }
 0x301   : > { %2645 = vtanh.f32 %v1157_v28  ;;  %v1161_v34 = vadd.f32 %v1160_v32, %v918_v29  ;;  %v1050_v35 = vadd.f32 %v1049_v33, %v918_v29  ;;  %v1162_v36 = vpop.f32.mrb[37].mxu1  ;;  %v943_v33 = vpop.permute.xlu1 %942 }
 0x302   : > { %2647 = vtanh.f32 %v1048_v31  ;;  %v1163_v37 = vadd.f32 %v1162_v36, %v918_v29 }
 0x303   : > { %2649 = vtanh.f32 %v1161_v34  ;;  %v1053_v39 = vpop.f32.mrb[38].mxu0 }
 0x304   : > { %v2632_v40 = vpop.eup %2631  ;;  %2651 = vtanh.f32 %v1050_v35  ;;  %v1054_v41 = vadd.f32 %v1053_v39, %v923_v38  ;;  %v1166_v42 = vpop.f32.mrb[38].mxu1 }
 0x305   : > { %v1055_v43 = vpop.f32.mrb[39].mxu0  ;;  %v2634_v44 = vpop.eup %2633  ;;  %2653 = vtanh.f32 %v1163_v37  ;;  %v1167_v45 = vadd.f32 %v1166_v42, %v923_v38 }
 0x306   : > { %v1056_v46 = vadd.f32 %v1055_v43, %v923_v38  ;;  %v1168_v47 = vpop.f32.mrb[39].mxu1  ;;  %v2636_v48 = vpop.eup %2635  ;;  %2655 = vtanh.f32 %v1054_v41 }
 0x307   : > { %v1169_v49 = vadd.f32 %v1168_v47, %v923_v38  ;;  %v2638_v50 = vpop.eup %2637  ;;  %2657 = vtanh.f32 %v1167_v45  ;;  %v1059_v52 = vpop.f32.mrb[40].mxu0 }
 0x308   : > { %v2640_v53 = vpop.eup %2639  ;;  %2659 = vtanh.f32 %v1056_v46  ;;  %v1060_v54 = vadd.f32 %v1059_v52, %v928_v51  ;;  %v1172_v55 = vpop.f32.mrb[40].mxu1 }
 0x309   : > { %v1061_v56 = vpop.f32.mrb[41].mxu0  ;;  %v2642_v57 = vpop.eup %2641  ;;  %2661 = vtanh.f32 %v1169_v49  ;;  %v1173_v58 = vadd.f32 %v1172_v55, %v928_v51  ;;  %v2365_v61 = vpack.c.bf16 %v2640_v53, %v2632_v40 }
 0x30a   : > { %v1062_v59 = vadd.f32 %v1061_v56, %v928_v51  ;;  %v1174_v60 = vpop.f32.mrb[41].mxu1  ;;  %v2644_v62 = vpop.eup %2643  ;;  %2663 = vtanh.f32 %v1060_v54  ;;  %v2381_v1 = vpack.c.bf16 %v2642_v57, %v2634_v44 }
 0x30b   : > { %v1175_v63 = vadd.f32 %v1174_v60, %v928_v51  ;;  %v2646_v2 = vpop.eup %2645  ;;  %2665 = vtanh.f32 %v1173_v58  ;;  %v1065_v4 = vpop.f32.mrb[42].mxu0  ;;  %v2363_v5 = vpack.c.bf16 %v2644_v62, %v2636_v48 }
 0x30c   : > { %v2648_v6 = vpop.eup %2647  ;;  %2667 = vtanh.f32 %v1062_v59  ;;  %v1066_v7 = vadd.f32 %v1065_v4, %v933_v3  ;;  %v1178_v8 = vpop.f32.mrb[42].mxu1  ;;  %v2379_v10 = vpack.c.bf16 %v2646_v2, %v2638_v50 }
 0x30d   : > { %v1067_v9 = vpop.f32.mrb[43].mxu0  ;;  %v2650_v11 = vpop.eup %2649  ;;  %2669 = vtanh.f32 %v1175_v63  ;;  %v1179_v12 = vadd.f32 %v1178_v8, %v933_v3  ;;  %2364 = vmatprep.subr.bf16.mxu0 %v2363_v5  ;;  %v2227_v5 = vld [vmem:[%s3412_s1 + $0x80] sm:$0xff]  ;;  %v2230_v8 = vld [vmem:[%s3412_s1 + $0x98] sm:$0xff] }
 0x30e   : > { %v1068_v13 = vadd.f32 %v1067_v9, %v933_v3  ;;  %v1180_v14 = vpop.f32.mrb[43].mxu1  ;;  %v2652_v15 = vpop.eup %2651  ;;  %2671 = vtanh.f32 %v1066_v7  ;;  %2380 = vmatprep.subr.bf16.mxu1 %v2379_v10  ;;  %2366 = vmatpush1.bf16.msra.mxu0 %v2365_v61  ;;  %v2229_v7 = vld [vmem:[%s3412_s1 + $0x90] sm:$0xff]  ;;  %v2231_v9 = vld [vmem:[%s3412_s1 + $0xa0] sm:$0xff]  ;;  %v2232_v10 = vld [vmem:[%s3412_s1 + $0xa8] sm:$0xff] }
 0x30f   : > { %v1181_v16 = vadd.f32 %v1180_v14, %v933_v3  ;;  %v2654_v17 = vpop.eup %2653  ;;  %2673 = vtanh.f32 %v1179_v12  ;;  %2382 = vmatpush1.bf16.msra.mxu1 %v2381_v1  ;;  %v1071_v19 = vpop.f32.mrb[44].mxu0  ;;  %v2234_v12 = vld [vmem:[%s3412_s1 + $0xb8] sm:$0xff] }
 0x310   : > { %v2656_v20 = vpop.eup %2655  ;;  %2675 = vtanh.f32 %v1068_v13  ;;  %v1072_v21 = vadd.f32 %v1071_v19, %v938_v18  ;;  %v1184_v22 = vpop.f32.mrb[44].mxu1 }
 0x311   : > { %v1073_v23 = vpop.f32.mrb[45].mxu0  ;;  %v2658_v24 = vpop.eup %2657  ;;  %2677 = vtanh.f32 %v1181_v16  ;;  %v1185_v25 = vadd.f32 %v1184_v22, %v938_v18  ;;  %v2369_v28 = vpack.c.bf16 %v2656_v20, %v2648_v6  ;;  %v2228_v6 = vld [vmem:[%s3412_s1 + $0x88] sm:$0xff] }
 0x312   : > { %v1074_v26 = vadd.f32 %v1073_v23, %v938_v18  ;;  %v1186_v27 = vpop.f32.mrb[45].mxu1  ;;  %v2660_v29 = vpop.eup %2659  ;;  %2679 = vtanh.f32 %v1072_v21  ;;  %v2385_v31 = vpack.c.bf16 %v2658_v24, %v2650_v11  ;;  %v2233_v11 = vld [vmem:[%s3412_s1 + $0xb0] sm:$0xff] }
 0x313   : > { %v1187_v30 = vadd.f32 %v1186_v27, %v938_v18  ;;  %v2662_v32 = vpop.eup %2661  ;;  %2681 = vtanh.f32 %v1185_v25  ;;  %v1077_v34 = vpop.f32.mrb[46].mxu0  ;;  %v2367_v35 = vpack.c.bf16 %v2660_v29, %v2652_v15 }
 0x314   : > { %v2664_v36 = vpop.eup %2663  ;;  %2683 = vtanh.f32 %v1074_v26  ;;  %v1078_v37 = vadd.f32 %v1077_v34, %v943_v33  ;;  %v1190_v38 = vpop.f32.mrb[46].mxu1  ;;  %v2383_v40 = vpack.c.bf16 %v2662_v32, %v2654_v17 }
 0x315   : > { %v1079_v39 = vpop.f32.mrb[47].mxu0  ;;  %v2666_v41 = vpop.eup %2665  ;;  %2685 = vtanh.f32 %v1187_v30  ;;  %v1191_v42 = vadd.f32 %v1190_v38, %v943_v33  ;;  %2368 = vmatprep.subr.bf16.mxu0 %v2367_v35 }
 0x316   : > { %v1080_v43 = vadd.f32 %v1079_v39, %v943_v33  ;;  %v1192_v44 = vpop.f32.mrb[47].mxu1  ;;  %v2668_v45 = vpop.eup %2667  ;;  %2687 = vtanh.f32 %v1078_v37  ;;  %2384 = vmatprep.subr.bf16.mxu1 %v2383_v40  ;;  %2370 = vmatpush1.bf16.msra.mxu0 %v2369_v28 }
 0x317   : > { %v1193_v46 = vadd.f32 %v1192_v44, %v943_v33  ;;  %v2670_v47 = vpop.eup %2669  ;;  %2689 = vtanh.f32 %v1191_v42  ;;  %2386 = vmatpush1.bf16.msra.mxu1 %v2385_v31  ;;  %v1248_v13 = vpop.permute.xlu0 %1247 }
 0x318   : > { %v2672_v48 = vpop.eup %2671  ;;  %2691 = vtanh.f32 %v1080_v43  ;;  %v1253_v22 = vpop.permute.xlu1 %1252 }
 0x319   : > { %v2674_v49 = vpop.eup %2673  ;;  %2693 = vtanh.f32 %v1193_v46  ;;  %v2373_v50 = vpack.c.bf16 %v2672_v48, %v2664_v36 }
 0x31a   : > { %v2676_v51 = vpop.eup %2675  ;;  %v2389_v52 = vpack.c.bf16 %v2674_v49, %v2666_v41 }
 0x31b   : > { %v2678_v53 = vpop.eup %2677  ;;  %v2371_v54 = vpack.c.bf16 %v2676_v51, %v2668_v45  ;;  %v1258_v31 = vpop.permute.xlu0 %1257 }
 0x31c   : > { %v2680_v55 = vpop.eup %2679  ;;  %v2387_v56 = vpack.c.bf16 %v2678_v53, %v2670_v47  ;;  %v1263_v40 = vpop.permute.xlu1 %1262 }
 0x31d   : > { %v2682_v57 = vpop.eup %2681  ;;  %2372 = vmatprep.subr.bf16.mxu0 %v2371_v54 }
 0x31e   : > { %v2684_v58 = vpop.eup %2683  ;;  %2388 = vmatprep.subr.bf16.mxu1 %v2387_v56  ;;  %2374 = vmatpush1.bf16.msra.mxu0 %v2373_v50 }
 0x31f   : > { %v2686_v59 = vpop.eup %2685  ;;  %2390 = vmatpush1.bf16.msra.mxu1 %v2389_v52  ;;  %v1268_v53 = vpop.permute.xlu0 %1267 }
 0x320   : > { %v2688_v60 = vpop.eup %2687 }
 0x321   : > { %v2690_v61 = vpop.eup %2689  ;;  %v2377_v62 = vpack.c.bf16 %v2688_v60, %v2680_v55 }
 0x322   : > { %v2692_v63 = vpop.eup %2691  ;;  %v2393_v1 = vpack.c.bf16 %v2690_v61, %v2682_v57 }
 0x323   : > { %v2694_v2 = vpop.eup %2693  ;;  %v2375_v3 = vpack.c.bf16 %v2692_v63, %v2684_v58 }
 0x324   : > { %v2391_v4 = vpack.c.bf16 %v2694_v2, %v2686_v59 }
 0x325   : > { %2376 = vmatprep.subr.bf16.mxu0 %v2375_v3 }
 0x326   : > { %2392 = vmatprep.subr.bf16.mxu1 %v2391_v4  ;;  %2378 = vmatpush1.bf16.msra.mxu0 %v2377_v62 }
 0x327   : > { %2394 = vmatpush1.bf16.msra.mxu1 %v2393_v1 }
 0x329   : > { %2243 = vmatmul.mubr.msk.f32.vlgmr.msra.gmra.mrb[48].mxu0 %vm604_vm1, %v2227_v5 }
 0x32a   : > { %2251 = vmatmul.mubr.msk.f32.vlgmr.msra.gmra.mrb[48].mxu1 %vm604_vm1, %v2227_v5  ;;  %1379 = vmatprep.mubr.f32.mxu0 %v2887_v0  ;;  %v1273_v5 = vpop.permute.xlu1 %1272 }
 0x32b   : > { %1492 = vmatprep.mubr.f32.mxu1 %v2887_v0 }
 0x32d   : > { %2244 = vmatmul.mubr.msk.f32.gmra.mrb[50].mxu0 %vm604_vm1, %v2228_v6 }
 0x32e   : > { %2252 = vmatmul.mubr.msk.f32.gmra.mrb[50].mxu1 %vm604_vm1, %v2228_v6  ;;  %1385 = vmatprep.mubr.f32.mxu0 %v2887_v0 }
 0x32f   : > { %1498 = vmatprep.mubr.f32.mxu1 %v2887_v0 }
 0x331   : > { %2245 = vmatmul.mubr.msk.f32.gmra.mrb[52].mxu0 %vm604_vm1, %v2229_v7 }
 0x332   : > { %2253 = vmatmul.mubr.msk.f32.gmra.mrb[52].mxu1 %vm604_vm1, %v2229_v7  ;;  %1391 = vmatprep.mubr.f32.mxu0 %v2887_v0 }
 0x333   : > { %1504 = vmatprep.mubr.f32.mxu1 %v2887_v0 }
 0x335   : > { %2246 = vmatmul.mubr.msk.f32.gmra.mrb[54].mxu0 %vm604_vm1, %v2230_v8 }
 0x336   : > { %2254 = vmatmul.mubr.msk.f32.gmra.mrb[54].mxu1 %vm604_vm1, %v2230_v8  ;;  %1397 = vmatprep.mubr.f32.mxu0 %v2887_v0 }
 0x337   : > { %1510 = vmatprep.mubr.f32.mxu1 %v2887_v0 }
 0x339   : > { %2247 = vmatmul.mubr.msk.f32.gmra.mrb[56].mxu0 %vm604_vm1, %v2231_v9 }
 0x33a   : > { %2255 = vmatmul.mubr.msk.f32.gmra.mrb[56].mxu1 %vm604_vm1, %v2231_v9  ;;  %1403 = vmatprep.mubr.f32.mxu0 %v2887_v0 }
 0x33b   : > { %1516 = vmatprep.mubr.f32.mxu1 %v2887_v0 }
 0x33d   : > { %2248 = vmatmul.mubr.msk.f32.gmra.mrb[58].mxu0 %vm604_vm1, %v2232_v10 }
 0x33e   : > { %2256 = vmatmul.mubr.msk.f32.gmra.mrb[58].mxu1 %vm604_vm1, %v2232_v10  ;;  %1409 = vmatprep.mubr.f32.mxu0 %v2887_v0 }
 0x33f   : > { %1522 = vmatprep.mubr.f32.mxu1 %v2887_v0 }
 0x341   : > { %2249 = vmatmul.mubr.msk.f32.gmra.mrb[60].mxu0 %vm604_vm1, %v2233_v11 }
 0x342   : > { %2257 = vmatmul.mubr.msk.f32.gmra.mrb[60].mxu1 %vm604_vm1, %v2233_v11  ;;  %1415 = vmatprep.mubr.f32.mxu0 %v2887_v0 }
 0x343   : > { %1528 = vmatprep.mubr.f32.mxu1 %v2887_v0 }
 0x345   : > { %2250 = vmatmul.mubr.msk.f32.gmra.mrb[62].mxu0 %vm604_vm1, %v2234_v12 }
 0x346   : > { %2258 = vmatmul.mubr.msk.f32.gmra.mrb[62].mxu1 %vm604_vm1, %v2234_v12  ;;  %1713 = vmatprep.mubr.f32.mxu0 %v2887_v0 }
 0x347   : > { %1826 = vmatprep.mubr.f32.mxu1 %v2887_v0 }
 0x3fc   : > { %v1375_v14 = vpop.f32.mrb[48].mxu0 }
 0x3fd   : > { %v1376_v15 = vadd.f32 %v1375_v14, %v1248_v13  ;;  %v1488_v16 = vpop.f32.mrb[48].mxu1  ;;  %v1377_v17 = vpop.f32.mrb[49].mxu0 }
 0x3fe   : > { %v1489_v18 = vadd.f32 %v1488_v16, %v1248_v13  ;;  %v1378_v19 = vadd.f32 %v1377_v17, %v1248_v13  ;;  %v1490_v20 = vpop.f32.mrb[49].mxu1 }
 0x3ff   : > { %2695 = vtanh.f32 %v1376_v15  ;;  %v1491_v21 = vadd.f32 %v1490_v20, %v1248_v13  ;;  %v1278_v20 = vpop.permute.xlu0 %1277 }
 0x400   : > { %2697 = vtanh.f32 %v1489_v18  ;;  %v1381_v23 = vpop.f32.mrb[50].mxu0 }
 0x401   : > { %2699 = vtanh.f32 %v1378_v19  ;;  %v1382_v24 = vadd.f32 %v1381_v23, %v1253_v22  ;;  %v1494_v25 = vpop.f32.mrb[50].mxu1  ;;  %v1383_v26 = vpop.f32.mrb[51].mxu0 }
 0x402   : > { %2701 = vtanh.f32 %v1491_v21  ;;  %v1495_v27 = vadd.f32 %v1494_v25, %v1253_v22  ;;  %v1384_v28 = vadd.f32 %v1383_v26, %v1253_v22  ;;  %v1496_v29 = vpop.f32.mrb[51].mxu1 }
 0x403   : > { %2703 = vtanh.f32 %v1382_v24  ;;  %v1497_v30 = vadd.f32 %v1496_v29, %v1253_v22 }
 0x404   : > { %2705 = vtanh.f32 %v1495_v27  ;;  %v1387_v32 = vpop.f32.mrb[52].mxu0 }
 0x405   : > { %2707 = vtanh.f32 %v1384_v28  ;;  %v1388_v33 = vadd.f32 %v1387_v32, %v1258_v31  ;;  %v1500_v34 = vpop.f32.mrb[52].mxu1  ;;  %v1389_v35 = vpop.f32.mrb[53].mxu0 }
 0x406   : > { %2709 = vtanh.f32 %v1497_v30  ;;  %v1501_v36 = vadd.f32 %v1500_v34, %v1258_v31  ;;  %v1390_v37 = vadd.f32 %v1389_v35, %v1258_v31  ;;  %v1502_v38 = vpop.f32.mrb[53].mxu1  ;;  %v1283_v35 = vpop.permute.xlu1 %1282 }
 0x407   : > { %2711 = vtanh.f32 %v1388_v33  ;;  %v1503_v39 = vadd.f32 %v1502_v38, %v1258_v31 }
 0x408   : > { %2713 = vtanh.f32 %v1501_v36  ;;  %v1393_v41 = vpop.f32.mrb[54].mxu0 }
 0x409   : > { %v2696_v42 = vpop.eup %2695  ;;  %2715 = vtanh.f32 %v1390_v37  ;;  %v1394_v43 = vadd.f32 %v1393_v41, %v1263_v40  ;;  %v1506_v44 = vpop.f32.mrb[54].mxu1 }
 0x40a   : > { %v1395_v45 = vpop.f32.mrb[55].mxu0  ;;  %v2698_v46 = vpop.eup %2697  ;;  %2717 = vtanh.f32 %v1503_v39  ;;  %v1507_v47 = vadd.f32 %v1506_v44, %v1263_v40 }
 0x40b   : > { %v1396_v48 = vadd.f32 %v1395_v45, %v1263_v40  ;;  %v1508_v49 = vpop.f32.mrb[55].mxu1  ;;  %v2700_v50 = vpop.eup %2699  ;;  %2719 = vtanh.f32 %v1394_v43 }
 0x40c   : > { %v1509_v51 = vadd.f32 %v1508_v49, %v1263_v40  ;;  %v2702_v52 = vpop.eup %2701  ;;  %2721 = vtanh.f32 %v1507_v47  ;;  %v1399_v54 = vpop.f32.mrb[56].mxu0 }
 0x40d   : > { %v2704_v55 = vpop.eup %2703  ;;  %2723 = vtanh.f32 %v1396_v48  ;;  %v1400_v56 = vadd.f32 %v1399_v54, %v1268_v53  ;;  %v1512_v57 = vpop.f32.mrb[56].mxu1 }
 0x40e   : > { %v1401_v58 = vpop.f32.mrb[57].mxu0  ;;  %v2706_v59 = vpop.eup %2705  ;;  %2725 = vtanh.f32 %v1509_v51  ;;  %v1513_v60 = vadd.f32 %v1512_v57, %v1268_v53  ;;  %v2397_v63 = vpack.c.bf16 %v2704_v55, %v2696_v42 }
 0x40f   : > { %v1402_v61 = vadd.f32 %v1401_v58, %v1268_v53  ;;  %v1514_v62 = vpop.f32.mrb[57].mxu1  ;;  %v2708_v1 = vpop.eup %2707  ;;  %2727 = vtanh.f32 %v1400_v56  ;;  %v2413_v3 = vpack.c.bf16 %v2706_v59, %v2698_v46 }
 0x410   : > { %v1515_v2 = vadd.f32 %v1514_v62, %v1268_v53  ;;  %v2710_v4 = vpop.eup %2709  ;;  %2729 = vtanh.f32 %v1513_v60  ;;  %v1405_v6 = vpop.f32.mrb[58].mxu0  ;;  %v2395_v7 = vpack.c.bf16 %v2708_v1, %v2700_v50 }
 0x411   : > { %v2712_v8 = vpop.eup %2711  ;;  %2731 = vtanh.f32 %v1402_v61  ;;  %v1406_v9 = vadd.f32 %v1405_v6, %v1273_v5  ;;  %v1518_v10 = vpop.f32.mrb[58].mxu1  ;;  %v2411_v12 = vpack.c.bf16 %v2710_v4, %v2702_v52 }
 0x412   : > { %v1407_v11 = vpop.f32.mrb[59].mxu0  ;;  %v2714_v13 = vpop.eup %2713  ;;  %2733 = vtanh.f32 %v1515_v2  ;;  %v1519_v14 = vadd.f32 %v1518_v10, %v1273_v5  ;;  %2396 = vmatprep.subr.bf16.mxu0 %v2395_v7  ;;  %v2259_v7 = vld [vmem:[%s3412_s1 + $0xc0] sm:$0xff]  ;;  %v2262_v10 = vld [vmem:[%s3412_s1 + $0xd8] sm:$0xff] }
 0x413   : > { %v1408_v15 = vadd.f32 %v1407_v11, %v1273_v5  ;;  %v1520_v16 = vpop.f32.mrb[59].mxu1  ;;  %v2716_v17 = vpop.eup %2715  ;;  %2735 = vtanh.f32 %v1406_v9  ;;  %2412 = vmatprep.subr.bf16.mxu1 %v2411_v12  ;;  %2398 = vmatpush1.bf16.msra.mxu0 %v2397_v63  ;;  %v2261_v9 = vld [vmem:[%s3412_s1 + $0xd0] sm:$0xff]  ;;  %v2263_v11 = vld [vmem:[%s3412_s1 + $0xe0] sm:$0xff]  ;;  %v2264_v12 = vld [vmem:[%s3412_s1 + $0xe8] sm:$0xff] }
 0x414   : > { %v1521_v18 = vadd.f32 %v1520_v16, %v1273_v5  ;;  %v2718_v19 = vpop.eup %2717  ;;  %2737 = vtanh.f32 %v1519_v14  ;;  %2414 = vmatpush1.bf16.msra.mxu1 %v2413_v3  ;;  %v1411_v21 = vpop.f32.mrb[60].mxu0  ;;  %v2266_v14 = vld [vmem:[%s3412_s1 + $0xf8] sm:$0xff] }
 0x415   : > { %v2720_v22 = vpop.eup %2719  ;;  %2739 = vtanh.f32 %v1408_v15  ;;  %v1412_v23 = vadd.f32 %v1411_v21, %v1278_v20  ;;  %v1524_v24 = vpop.f32.mrb[60].mxu1 }
 0x416   : > { %v1413_v25 = vpop.f32.mrb[61].mxu0  ;;  %v2722_v26 = vpop.eup %2721  ;;  %2741 = vtanh.f32 %v1521_v18  ;;  %v1525_v27 = vadd.f32 %v1524_v24, %v1278_v20  ;;  %v2401_v30 = vpack.c.bf16 %v2720_v22, %v2712_v8  ;;  %v2260_v8 = vld [vmem:[%s3412_s1 + $0xc8] sm:$0xff] }
 0x417   : > { %v1414_v28 = vadd.f32 %v1413_v25, %v1278_v20  ;;  %v1526_v29 = vpop.f32.mrb[61].mxu1  ;;  %v2724_v31 = vpop.eup %2723  ;;  %2743 = vtanh.f32 %v1412_v23  ;;  %v2417_v33 = vpack.c.bf16 %v2722_v26, %v2714_v13  ;;  %v2265_v13 = vld [vmem:[%s3412_s1 + $0xf0] sm:$0xff] }
 0x418   : > { %v1527_v32 = vadd.f32 %v1526_v29, %v1278_v20  ;;  %v2726_v34 = vpop.eup %2725  ;;  %2745 = vtanh.f32 %v1525_v27  ;;  %v1417_v36 = vpop.f32.mrb[62].mxu0  ;;  %v2399_v37 = vpack.c.bf16 %v2724_v31, %v2716_v17 }
 0x419   : > { %v2728_v38 = vpop.eup %2727  ;;  %2747 = vtanh.f32 %v1414_v28  ;;  %v1418_v39 = vadd.f32 %v1417_v36, %v1283_v35  ;;  %v1530_v40 = vpop.f32.mrb[62].mxu1  ;;  %v2415_v42 = vpack.c.bf16 %v2726_v34, %v2718_v19 }
 0x41a   : > { %v1419_v41 = vpop.f32.mrb[63].mxu0  ;;  %v2730_v43 = vpop.eup %2729  ;;  %2749 = vtanh.f32 %v1527_v32  ;;  %v1531_v44 = vadd.f32 %v1530_v40, %v1283_v35  ;;  %2400 = vmatprep.subr.bf16.mxu0 %v2399_v37 }
 0x41b   : > { %v1420_v45 = vadd.f32 %v1419_v41, %v1283_v35  ;;  %v1532_v46 = vpop.f32.mrb[63].mxu1  ;;  %v2732_v47 = vpop.eup %2731  ;;  %2751 = vtanh.f32 %v1418_v39  ;;  %2416 = vmatprep.subr.bf16.mxu1 %v2415_v42  ;;  %2402 = vmatpush1.bf16.msra.mxu0 %v2401_v30 }
 0x41c   : > { %v1533_v48 = vadd.f32 %v1532_v46, %v1283_v35  ;;  %v2734_v49 = vpop.eup %2733  ;;  %2753 = vtanh.f32 %v1531_v44  ;;  %2418 = vmatpush1.bf16.msra.mxu1 %v2417_v33  ;;  %v1588_v15 = vpop.permute.xlu0 %1587 }
 0x41d   : > { %v2736_v50 = vpop.eup %2735  ;;  %2755 = vtanh.f32 %v1420_v45  ;;  %v1593_v24 = vpop.permute.xlu1 %1592 }
 0x41e   : > { %v2738_v51 = vpop.eup %2737  ;;  %2757 = vtanh.f32 %v1533_v48  ;;  %v2405_v52 = vpack.c.bf16 %v2736_v50, %v2728_v38 }
 0x41f   : > { %v2740_v53 = vpop.eup %2739  ;;  %v2421_v54 = vpack.c.bf16 %v2738_v51, %v2730_v43 }
 0x420   : > { %v2742_v55 = vpop.eup %2741  ;;  %v2403_v56 = vpack.c.bf16 %v2740_v53, %v2732_v47  ;;  %v1598_v32 = vpop.permute.xlu0 %1597 }
 0x421   : > { %v2744_v57 = vpop.eup %2743  ;;  %v2419_v58 = vpack.c.bf16 %v2742_v55, %v2734_v49  ;;  %v1603_v41 = vpop.permute.xlu1 %1602 }
 0x422   : > { %v2746_v59 = vpop.eup %2745  ;;  %2404 = vmatprep.subr.bf16.mxu0 %v2403_v56 }
 0x423   : > { %v2748_v60 = vpop.eup %2747  ;;  %2420 = vmatprep.subr.bf16.mxu1 %v2419_v58  ;;  %2406 = vmatpush1.bf16.msra.mxu0 %v2405_v52 }
 0x424   : > { %v2750_v61 = vpop.eup %2749  ;;  %2422 = vmatpush1.bf16.msra.mxu1 %v2421_v54  ;;  %v1608_v54 = vpop.permute.xlu0 %1607 }
 0x425   : > { %v2752_v62 = vpop.eup %2751 }
 0x426   : > { %v2754_v63 = vpop.eup %2753  ;;  %v2409_v1 = vpack.c.bf16 %v2752_v62, %v2744_v57 }
 0x427   : > { %v2756_v2 = vpop.eup %2755  ;;  %v2425_v3 = vpack.c.bf16 %v2754_v63, %v2746_v59 }
 0x428   : > { %v2758_v4 = vpop.eup %2757  ;;  %v2407_v5 = vpack.c.bf16 %v2756_v2, %v2748_v60 }
 0x429   : > { %v2423_v6 = vpack.c.bf16 %v2758_v4, %v2750_v61 }
 0x42a   : > { %2408 = vmatprep.subr.bf16.mxu0 %v2407_v5 }
 0x42b   : > { %2424 = vmatprep.subr.bf16.mxu1 %v2423_v6  ;;  %2410 = vmatpush1.bf16.msra.mxu0 %v2409_v1  ;;  %v1613_v6 = vpop.permute.xlu1 %1612 }
 0x42c   : > { %2426 = vmatpush1.bf16.msra.mxu1 %v2425_v3 }
 0x42e   : > { %2275 = vmatmul.mubr.msk.f32.vlgmr.msra.gmra.mrb[64].mxu0 %vm604_vm1, %v2259_v7 }
 0x42f   : > { %2283 = vmatmul.mubr.msk.f32.vlgmr.msra.gmra.mrb[64].mxu1 %vm604_vm1, %v2259_v7  ;;  %1719 = vmatprep.mubr.f32.mxu0 %v2887_v0 }
 0x430   : > { %1832 = vmatprep.mubr.f32.mxu1 %v2887_v0 }
 0x432   : > { %2276 = vmatmul.mubr.msk.f32.gmra.mrb[66].mxu0 %vm604_vm1, %v2260_v8 }
 0x433   : > { %2284 = vmatmul.mubr.msk.f32.gmra.mrb[66].mxu1 %vm604_vm1, %v2260_v8  ;;  %1725 = vmatprep.mubr.f32.mxu0 %v2887_v0 }
 0x434   : > { %1838 = vmatprep.mubr.f32.mxu1 %v2887_v0 }
 0x436   : > { %2277 = vmatmul.mubr.msk.f32.gmra.mrb[68].mxu0 %vm604_vm1, %v2261_v9 }
 0x437   : > { %2285 = vmatmul.mubr.msk.f32.gmra.mrb[68].mxu1 %vm604_vm1, %v2261_v9  ;;  %1731 = vmatprep.mubr.f32.mxu0 %v2887_v0 }
 0x438   : > { %1844 = vmatprep.mubr.f32.mxu1 %v2887_v0 }
 0x43a   : > { %2278 = vmatmul.mubr.msk.f32.gmra.mrb[70].mxu0 %vm604_vm1, %v2262_v10 }
 0x43b   : > { %2286 = vmatmul.mubr.msk.f32.gmra.mrb[70].mxu1 %vm604_vm1, %v2262_v10  ;;  %1737 = vmatprep.mubr.f32.mxu0 %v2887_v0 }
 0x43c   : > { %1850 = vmatprep.mubr.f32.mxu1 %v2887_v0 }
 0x43e   : > { %2279 = vmatmul.mubr.msk.f32.gmra.mrb[72].mxu0 %vm604_vm1, %v2263_v11 }
 0x43f   : > { %2287 = vmatmul.mubr.msk.f32.gmra.mrb[72].mxu1 %vm604_vm1, %v2263_v11  ;;  %1743 = vmatprep.mubr.f32.mxu0 %v2887_v0 }
 0x440   : > { %1856 = vmatprep.mubr.f32.mxu1 %v2887_v0 }
 0x442   : > { %2280 = vmatmul.mubr.msk.f32.gmra.mrb[74].mxu0 %vm604_vm1, %v2264_v12 }
 0x443   : > { %2288 = vmatmul.mubr.msk.f32.gmra.mrb[74].mxu1 %vm604_vm1, %v2264_v12  ;;  %1749 = vmatprep.mubr.f32.mxu0 %v2887_v0 }
 0x444   : > { %1862 = vmatprep.mubr.f32.mxu1 %v2887_v0 }
 0x446   : > { %2281 = vmatmul.mubr.msk.f32.gmra.mrb[76].mxu0 %vm604_vm1, %v2265_v13 }
 0x447   : > { %2289 = vmatmul.mubr.msk.f32.gmra.mrb[76].mxu1 %vm604_vm1, %v2265_v13  ;;  %1755 = vmatprep.mubr.f32.mxu0 %v2887_v0 }
 0x448   : > { %1868 = vmatprep.mubr.f32.mxu1 %v2887_v0 }
 0x44a   : > { %2282 = vmatmul.mubr.msk.f32.gmra.mrb[78].mxu0 %vm604_vm1, %v2266_v14 }
 0x44b   : > { %2290 = vmatmul.mubr.msk.f32.gmra.mrb[78].mxu1 %vm604_vm1, %v2266_v14  ;;  %1981 = vmatprep.mubr.f32.mxu0 %v2887_v0 }
 0x44c   : > { %2052 = vmatprep.mubr.f32.mxu1 %v2887_v0 }
 0x501   : > { %v1715_v16 = vpop.f32.mrb[64].mxu0 }
 0x502   : > { %v1716_v17 = vadd.f32 %v1715_v16, %v1588_v15  ;;  %v1828_v18 = vpop.f32.mrb[64].mxu1  ;;  %v1717_v19 = vpop.f32.mrb[65].mxu0 }
 0x503   : > { %v1829_v20 = vadd.f32 %v1828_v18, %v1588_v15  ;;  %v1718_v21 = vadd.f32 %v1717_v19, %v1588_v15  ;;  %v1830_v22 = vpop.f32.mrb[65].mxu1 }
 0x504   : > { %2759 = vtanh.f32 %v1716_v17  ;;  %v1831_v23 = vadd.f32 %v1830_v22, %v1588_v15 }
 0x505   : > { %2761 = vtanh.f32 %v1829_v20  ;;  %v1721_v25 = vpop.f32.mrb[66].mxu0 }
 0x506   : > { %2763 = vtanh.f32 %v1718_v21  ;;  %v1722_v26 = vadd.f32 %v1721_v25, %v1593_v24  ;;  %v1834_v27 = vpop.f32.mrb[66].mxu1  ;;  %v1723_v28 = vpop.f32.mrb[67].mxu0 }
 0x507   : > { %2765 = vtanh.f32 %v1831_v23  ;;  %v1835_v29 = vadd.f32 %v1834_v27, %v1593_v24  ;;  %v1724_v0 = vadd.f32 %v1723_v28, %v1593_v24  ;;  %v1836_v30 = vpop.f32.mrb[67].mxu1  ;;  %v1618_v21 = vpop.permute.xlu0 %1617 }
 0x508   : > { %2767 = vtanh.f32 %v1722_v26  ;;  %v1837_v31 = vadd.f32 %v1836_v30, %v1593_v24 }
 0x509   : > { %2769 = vtanh.f32 %v1835_v29  ;;  %v1727_v33 = vpop.f32.mrb[68].mxu0 }
 0x50a   : > { %2771 = vtanh.f32 %v1724_v0  ;;  %v1728_v34 = vadd.f32 %v1727_v33, %v1598_v32  ;;  %v1840_v35 = vpop.f32.mrb[68].mxu1  ;;  %v1729_v36 = vpop.f32.mrb[69].mxu0 }
 0x50b   : > { %2773 = vtanh.f32 %v1837_v31  ;;  %v1841_v37 = vadd.f32 %v1840_v35, %v1598_v32  ;;  %v1730_v38 = vadd.f32 %v1729_v36, %v1598_v32  ;;  %v1842_v39 = vpop.f32.mrb[69].mxu1  ;;  %v1623_v35 = vpop.permute.xlu1 %1622 }
 0x50c   : > { %2775 = vtanh.f32 %v1728_v34  ;;  %v1843_v40 = vadd.f32 %v1842_v39, %v1598_v32 }
 0x50d   : > { %2777 = vtanh.f32 %v1841_v37  ;;  %v1733_v42 = vpop.f32.mrb[70].mxu0 }
 0x50e   : > { %v2760_v43 = vpop.eup %2759  ;;  %2779 = vtanh.f32 %v1730_v38  ;;  %v1734_v44 = vadd.f32 %v1733_v42, %v1603_v41  ;;  %v1846_v45 = vpop.f32.mrb[70].mxu1 }
 0x50f   : > { %v1735_v46 = vpop.f32.mrb[71].mxu0  ;;  %v2762_v47 = vpop.eup %2761  ;;  %2781 = vtanh.f32 %v1843_v40  ;;  %v1847_v48 = vadd.f32 %v1846_v45, %v1603_v41 }
 0x510   : > { %v1736_v49 = vadd.f32 %v1735_v46, %v1603_v41  ;;  %v1848_v50 = vpop.f32.mrb[71].mxu1  ;;  %v2764_v51 = vpop.eup %2763  ;;  %2783 = vtanh.f32 %v1734_v44 }
 0x511   : > { %v1849_v52 = vadd.f32 %v1848_v50, %v1603_v41  ;;  %v2766_v53 = vpop.eup %2765  ;;  %2785 = vtanh.f32 %v1847_v48  ;;  %v1739_v55 = vpop.f32.mrb[72].mxu0 }
 0x512   : > { %v2768_v56 = vpop.eup %2767  ;;  %2787 = vtanh.f32 %v1736_v49  ;;  %v1740_v57 = vadd.f32 %v1739_v55, %v1608_v54  ;;  %v1852_v58 = vpop.f32.mrb[72].mxu1 }
 0x513   : > { %v1741_v59 = vpop.f32.mrb[73].mxu0  ;;  %v2770_v60 = vpop.eup %2769  ;;  %2789 = vtanh.f32 %v1849_v52  ;;  %v1853_v61 = vadd.f32 %v1852_v58, %v1608_v54  ;;  %v2429_v1 = vpack.c.bf16 %v2768_v56, %v2760_v43 }
 0x514   : > { %v1742_v62 = vadd.f32 %v1741_v59, %v1608_v54  ;;  %v1854_v63 = vpop.f32.mrb[73].mxu1  ;;  %v2772_v2 = vpop.eup %2771  ;;  %2791 = vtanh.f32 %v1740_v57  ;;  %v2445_v4 = vpack.c.bf16 %v2770_v60, %v2762_v47 }
 0x515   : > { %v1855_v3 = vadd.f32 %v1854_v63, %v1608_v54  ;;  %v2774_v5 = vpop.eup %2773  ;;  %2793 = vtanh.f32 %v1853_v61  ;;  %v1745_v7 = vpop.f32.mrb[74].mxu0  ;;  %v2427_v8 = vpack.c.bf16 %v2772_v2, %v2764_v51 }
 0x516   : > { %v2776_v9 = vpop.eup %2775  ;;  %2795 = vtanh.f32 %v1742_v62  ;;  %v1746_v10 = vadd.f32 %v1745_v7, %v1613_v6  ;;  %v1858_v11 = vpop.f32.mrb[74].mxu1  ;;  %v2443_v13 = vpack.c.bf16 %v2774_v5, %v2766_v53  ;;  %v1907_v7 = vld [vmem:[%s3414_s3] sm:$0x3] }
 0x517   : > { %v1747_v12 = vpop.f32.mrb[75].mxu0  ;;  %v2778_v14 = vpop.eup %2777  ;;  %2797 = vtanh.f32 %v1855_v3  ;;  %v1859_v15 = vadd.f32 %v1858_v11, %v1613_v6  ;;  %2428 = vmatprep.subr.bf16.mxu0 %v2427_v8  ;;  %v2889_v8 = vmov 1983009808  }
 0x518   : > { %v1748_v16 = vadd.f32 %v1747_v12, %v1613_v6  ;;  %v1860_v17 = vpop.f32.mrb[75].mxu1  ;;  %v2780_v18 = vpop.eup %2779  ;;  %2799 = vtanh.f32 %v1746_v10  ;;  %2444 = vmatprep.subr.bf16.mxu1 %v2443_v13  ;;  %2430 = vmatpush1.bf16.msra.mxu0 %v2429_v1  ;;  %v2068_v10 = vlaneseq }
 0x519   : > { %v1861_v19 = vadd.f32 %v1860_v17, %v1613_v6  ;;  %v2782_v20 = vpop.eup %2781  ;;  %2801 = vtanh.f32 %v1859_v15  ;;  %2446 = vmatpush1.bf16.msra.mxu1 %v2445_v4  ;;  %v1751_v22 = vpop.f32.mrb[76].mxu0 }
 0x51a   : > { %v2784_v23 = vpop.eup %2783  ;;  %2803 = vtanh.f32 %v1748_v16  ;;  %v1752_v24 = vadd.f32 %v1751_v22, %v1618_v21  ;;  %v1864_v25 = vpop.f32.mrb[76].mxu1  ;;  %v2069_v12 = vshrl.u32 %v2068_v10, 7 }
 0x51b   : > { %v1753_v26 = vpop.f32.mrb[77].mxu0  ;;  %v2786_v27 = vpop.eup %2785  ;;  %2805 = vtanh.f32 %v1861_v19  ;;  %v1865_v28 = vadd.f32 %v1864_v25, %v1618_v21  ;;  %v2433_v30 = vpack.c.bf16 %v2784_v23, %v2776_v9  ;;  %v2066_v9 = vunpack.c.l.s4 %v2889_v8 }
 0x51c   : > { %v1754_v29 = vadd.f32 %v1753_v26, %v1618_v21  ;;  %v1866_v0 = vpop.f32.mrb[77].mxu1  ;;  %v2788_v31 = vpop.eup %2787  ;;  %2807 = vtanh.f32 %v1752_v24  ;;  %v2449_v33 = vpack.c.bf16 %v2786_v27, %v2778_v14 }
 0x51d   : > { %v1867_v32 = vadd.f32 %v1866_v0, %v1618_v21  ;;  %v2790_v34 = vpop.eup %2789  ;;  %2809 = vtanh.f32 %v1865_v28  ;;  %v1757_v36 = vpop.f32.mrb[78].mxu0  ;;  %v2431_v37 = vpack.c.bf16 %v2788_v31, %v2780_v18  ;;  %v2067_v11 = vunpack.c.0.s8 %v2066_v9 }
 0x51e   : > { %v2792_v38 = vpop.eup %2791  ;;  %2811 = vtanh.f32 %v1754_v29  ;;  %v1758_v39 = vadd.f32 %v1757_v36, %v1623_v35  ;;  %v1870_v40 = vpop.f32.mrb[78].mxu1  ;;  %v2447_v42 = vpack.c.bf16 %v2790_v34, %v2782_v20 }
 0x51f   : > { %v1759_v41 = vpop.f32.mrb[79].mxu0  ;;  %v2794_v43 = vpop.eup %2793  ;;  %2813 = vtanh.f32 %v1867_v32  ;;  %v1871_v44 = vadd.f32 %v1870_v40, %v1623_v35  ;;  %2432 = vmatprep.subr.bf16.mxu0 %v2431_v37  ;;  %v2070_v20 = vsub.s32 %v2067_v11, %v2069_v12 }
 0x520   : > { %v1760_v45 = vadd.f32 %v1759_v41, %v1623_v35  ;;  %v1872_v46 = vpop.f32.mrb[79].mxu1  ;;  %v2796_v47 = vpop.eup %2795  ;;  %2815 = vtanh.f32 %v1758_v39  ;;  %2448 = vmatprep.subr.bf16.mxu1 %v2447_v42  ;;  %2434 = vmatpush1.bf16.msra.mxu0 %v2433_v30 }
 0x521   : > { %v1873_v48 = vadd.f32 %v1872_v46, %v1623_v35  ;;  %v2798_v49 = vpop.eup %2797  ;;  %2817 = vtanh.f32 %v1871_v44  ;;  %2450 = vmatpush1.bf16.msra.mxu1 %v2449_v33  ;;  %v1912_v13 = vpop.permute.xlu0 %1911 }
 0x522   : > { %v2800_v50 = vpop.eup %2799  ;;  %2819 = vtanh.f32 %v1760_v45 }
 0x523   : > { %v2802_v51 = vpop.eup %2801  ;;  %2821 = vtanh.f32 %v1873_v48  ;;  %v2437_v52 = vpack.c.bf16 %v2800_v50, %v2792_v38 }
 0x524   : > { %v2804_v53 = vpop.eup %2803  ;;  %v2453_v54 = vpack.c.bf16 %v2802_v51, %v2794_v43 }
 0x525   : > { %v2806_v55 = vpop.eup %2805  ;;  %v2435_v56 = vpack.c.bf16 %v2804_v53, %v2796_v47 }
 0x526   : > { %v2808_v57 = vpop.eup %2807  ;;  %v2451_v58 = vpack.c.bf16 %v2806_v55, %v2798_v49 }
 0x527   : > { %v2810_v59 = vpop.eup %2809  ;;  %2436 = vmatprep.subr.bf16.mxu0 %v2435_v56 }
 0x528   : > { %v2812_v60 = vpop.eup %2811  ;;  %2452 = vmatprep.subr.bf16.mxu1 %v2451_v58  ;;  %2438 = vmatpush1.bf16.msra.mxu0 %v2437_v52 }
 0x529   : > { %v2814_v61 = vpop.eup %2813  ;;  %2454 = vmatpush1.bf16.msra.mxu1 %v2453_v54 }
 0x52a   : > { %v2816_v62 = vpop.eup %2815 }
 0x52b   : > { %v2818_v63 = vpop.eup %2817  ;;  %v2441_v1 = vpack.c.bf16 %v2816_v62, %v2808_v57 }
 0x52c   : > { %v2820_v2 = vpop.eup %2819  ;;  %v2457_v3 = vpack.c.bf16 %v2818_v63, %v2810_v59 }
 0x52d   : > { %v2822_v4 = vpop.eup %2821  ;;  %v2439_v5 = vpack.c.bf16 %v2820_v2, %v2812_v60 }
 0x52e   : > { %v2455_v6 = vpack.c.bf16 %v2822_v4, %v2814_v61 }
 0x52f   : > { %2440 = vmatprep.subr.bf16.mxu0 %v2439_v5 }
 0x530   : > { %2456 = vmatprep.subr.bf16.mxu1 %v2455_v6  ;;  %2442 = vmatpush1.bf16.msra.mxu0 %v2441_v1 }
 0x531   : > { %2458 = vmatpush1.bf16.msra.mxu1 %v2457_v3 }
 0x533   : > { %2291 = vmatmul.mubr.msk.f32.vlgmr.msra.gmra.mrb[80].mxu0 %vm604_vm1, %v1907_v7 }
 0x534   : > { %2292 = vmatmul.mubr.msk.f32.vlgmr.msra.gmra.mrb[80].mxu1 %vm604_vm1, %v1907_v7 }
 0x606   : > { %v1983_v14 = vpop.f32.mrb[80].mxu0 }
 0x607   : > { %v1984_v15 = vadd.f32 %v1983_v14, %v1912_v13  ;;  %v2054_v16 = vpop.f32.mrb[80].mxu1  ;;  %v1985_v17 = vpop.f32.mrb[81].mxu0 }
 0x608   : > { %v2055_v18 = vadd.f32 %v2054_v16, %v1912_v13  ;;  %v1986_v19 = vadd.f32 %v1985_v17, %v1912_v13  ;;  %v2056_v21 = vpop.f32.mrb[81].mxu1 }
 0x609   : > { %v2057_v22 = vadd.f32 %v2056_v21, %v1912_v13 }
 0x60a   : > { %v2063_v23 = vcombine.low %v1984_v15, %v1986_v19 }
 0x60b   : > { %v2064_v24 = vcombine.low %v2055_v18, %v2057_v22 }
 0x60c   : > { %v2071_v25 = vrot.slane %v2063_v23, %v2070_v20 }
 0x60d   : > { %v2078_v26 = vrot.slane %v2064_v24, %v2070_v20 }
 0x60f   : > { %v2079_v27 = vcombine.low %v2071_v25, %v2078_v26 }
 0x611   : > { %2081 = vst [vmem:[%s245_s15] sm:$0xff] %v2079_v27 }
 0x612   : > { %2836 = shalt.err (!%p2833_p3)
}
 0x613   : > { %s2837_s9 = scalar_lea.hbm %s3369_s19, 128  ;;  %s2841_s12 = scalar_lea.hbm %s3417_s6, 256 }
 0x614   : > { %p2838_p4 = scmp.ne.s32.totalorder %s3369_s19, %s2837_s9  ;;  %p2842_p9 = scmp.lt.u32.totalorder %s3369_s19, %s3417_s6 }
 0x615   : > { %p2843_p10 = scmp.lt.u32.totalorder %s2841_s12, %s2837_s9  ;;  %p2845_p12 = scmp.lt.u32.totalorder %s2837_s9, %s3369_s19 }
 0x616   : > { %p2839_p7 = pnand %p2838_p4, %p2964_p5 }
 0x617   : > { %p2844_p11 = por %p2843_p10, %p2842_p9 }
 0x618   : > { %p2840_p8 = pneg %p2839_p7 }
 0x619   : > { %p2846_p13 = por %p2845_p12, %p2844_p11 }
 0x61b   : > { %p2847_p0 = pnand %p2846_p13, %p2840_p8 }
 0x61d   : > { %2850 = shalt.err (!%p2847_p0)
}
 0x61e   : > { %2459 = dma.vmem_to_hbm [thread:$0]  (%p2964_p5), %s3371_s16, 128, %s3369_s19, %s2083_s20  }
 0x61f PF: > { %p2465_p1 = scmp.ge.s32.totalorder %s2885_s24, 2  ;;  %s2109_s15 = sand.u32 1, %s2873_s21  }
 0x620   : > { %s2110_s17 = scalar_lea.sflag [#allocation3], %s2109_s15 }
 0x621   : > { %p2462_p2 = pnand %p2465_p1, %p2968_p6 }
 0x623   : > { %2868 = dma.done.wait (!%p2462_p2), %s2110_s17, 128  }
 0x624   : > { %2870 = vsyncadd (!%p2462_p2), %s2110_s17, 4294967168  ;;  %p16_p3 = scmp.ge.s32.totalorder %s2951_s27, 4   ;;  %s3420_s21 = smov %s2877_s22 }
 0x625   : > { %s3421_s22 = smov %s2881_s23  ;;  %s3422_s23 = smov %s2962_s30 }
 0x626   : > { %s3423_s24 = smov %s2951_s27  ;;  %18 = sbr.rel (!%p16_p3) target bundleno = 3 (0x3), region = 85 }
 0x62d   :  { %2115 = vsyncpa [#allocation3], 1 }
 0x62e   :  { %2117 = vsyncpa [#allocation3 + $0x1], 1 }

</bundles_post_ra>
